<compile_context>
chip_gen: v7x
topology: tpu7x:2x2x1
jax: 0.10.0
libtpu: 0.0.40
codegen_flags: <defaults>
</compile_context>

<pallas_src>
import functools
import math

import jax
import jax.numpy as jnp
from jax.experimental import pallas as pl
from jax.experimental.pallas import tpu as pltpu


# ---------------------------------------------------------------------------
# Pallas kernel: the _MemOutput contraction
#   out[m, b, e] = sum_s emb[s, b, e] * persona_input_mem[s, b, m]
# ---------------------------------------------------------------------------
def _mem_output_kernel(emb_ref, mem_ref, out_ref, *, feed_dtype, precision):
    # emb_ref: (S, bb, E)  module-native seq-major layout (no wrapper transpose)
    # mem_ref: (S, bb, M)
    # out_ref: (M, bb, E)  module-native output layout, lane-dense (E last)
    bb = emb_ref.shape[1]
    for b in range(bb):                     # bb is static & small -> unrolled tiny dots
        emb_b = emb_ref[:, b, :]            # (S, E)
        mem_b = mem_ref[:, b, :]            # (S, M)
        mem_t = mem_b.T                     # (M, S) -- tiny in-VMEM XLU transpose
        if feed_dtype is not None:
            emb_b = emb_b.astype(feed_dtype)   # VMEM-local cast: no HBM traffic
            mem_t = mem_t.astype(feed_dtype)
        out_ref[:, b, :] = jnp.dot(
            mem_t, emb_b,
            preferred_element_type=jnp.float32,
            precision=precision,
        ).astype(out_ref.dtype)


def _pick_batch_block(B, S, E, M, emb_isz, mem_isz, out_isz, target_bytes=4 << 20):
    """Largest sublane-aligned (x8) divisor of B whose double-buffered block
    footprint stays in the ~2-8 MiB sweet spot, preferring >=2 grid steps."""
    def footprint(bb):  # double-buffered inputs + double-buffered output
        return 2 * bb * (S * E * emb_isz + S * M * mem_isz + M * E * out_isz)

    cands = [d for d in range(8, B // 2 + 1, 8) if B % d == 0]
    fitting = [d for d in cands if footprint(d) <= target_bytes]
    if fitting:
        return max(fitting)
    if cands:
        return min(cands)        # even the smallest aligned block is big: take it
    return B                     # tiny / unaligned batch: single full-batch step


def mem_output(emb_sbe, persona_input_mem, *, batch_block=None,
               feed_dtype=jnp.bfloat16, precision=None, out_dtype=jnp.float32):
    """Pallas _MemOutput contraction, module-native layouts in and out.

    emb_sbe:           (S, B, E)   encoder output
    persona_input_mem: (S, B, M)
    returns:           (M, B, E)   == emb.permute(1,2,0).bmm(mem.transpose(0,1)).permute(2,0,1)
    """
    S, B, E = emb_sbe.shape
    S2, B2, M = persona_input_mem.shape
    assert (S2, B2) == (S, B)

    emb_isz = jnp.dtype(emb_sbe.dtype).itemsize
    mem_isz = jnp.dtype(persona_input_mem.dtype).itemsize
    out_isz = jnp.dtype(out_dtype).itemsize

    bb = (_pick_batch_block(B, S, E, M, emb_isz, mem_isz, out_isz)
          if batch_block is None else batch_block)
    assert B % bb == 0, "batch_block must divide B"
    assert bb == B or bb % 8 == 0, "batch block must be sublane-aligned (x8) or full"
    grid = (B // bb,)

    # Exact double-buffer VMEM accounting (+ small headroom for Mosaic internals),
    # clamped to 48 MiB so it always fits v7x's 64 MiB physical VMEM with headroom.
    emb_blk = bb * S * E * emb_isz
    mem_blk = bb * S * M * mem_isz
    out_blk = bb * M * E * out_isz
    vmem_limit = int(min(2 * (emb_blk + mem_blk + out_blk) + (4 << 20), 48 << 20))

    cost = pl.CostEstimate(
        flops=2 * B * M * S * E,
        transcendentals=0,
        bytes_accessed=B * (S * E * emb_isz + S * M * mem_isz + M * E * out_isz),
    )

    kernel = functools.partial(_mem_output_kernel,
                               feed_dtype=feed_dtype, precision=precision)

    return pl.pallas_call(
        kernel,
        grid=grid,
        in_specs=[
            pl.BlockSpec((S, bb, E), lambda i: (0, i, 0)),
            pl.BlockSpec((S, bb, M), lambda i: (0, i, 0)),
        ],
        out_specs=pl.BlockSpec((M, bb, E), lambda i: (0, i, 0)),
        out_shape=jax.ShapeDtypeStruct((M, B, E), out_dtype),
        compiler_params=pltpu.CompilerParams(
            dimension_semantics=("parallel",),   # shards batch steps across v7x's 2 TCs
            vmem_limit_bytes=vmem_limit,
        ),
        cost_estimate=cost,
    )(emb_sbe, persona_input_mem)


# ---------------------------------------------------------------------------
# Glue: stand-ins for the constructor-injected submodules
# ---------------------------------------------------------------------------
def sinusoidal_pe(S, E):
    pos = jnp.arange(S, dtype=jnp.float32)[:, None]
    div = jnp.exp(jnp.arange(0, E, 2, dtype=jnp.float32) * (-math.log(10000.0) / E))
    pe = jnp.zeros((S, E), jnp.float32)
    pe = pe.at[:, 0::2].set(jnp.sin(pos * div))
    pe = pe.at[:, 1::2].set(jnp.cos(pos * div))
    return pe


def emb_standin(persona, persona_pad_mask, emb_table):
    # TODO(synk): `self.emb` is a constructor-injected submodule not defined in the spec;
    # stand-in = embedding lookup * sqrt(E) + sinusoidal PE, padded positions zeroed.
    S, _ = persona.shape
    E = emb_table.shape[1]
    x = emb_table[persona] * math.sqrt(E) + sinusoidal_pe(S, E)[:, None, :]
    return jnp.where(persona_pad_mask.T[:, :, None], 0.0, x)  # (S, B, E)


def encoder_standin(x, persona_pad_mask):
    # TODO(synk): `self.encoder` is a constructor-injected submodule not defined in the
    # spec; treated as identity (eval mode).
    return x


# ---------------------------------------------------------------------------
# Pure-JAX reference for the _MemOutput contraction
# ---------------------------------------------------------------------------
def mem_output_reference(emb_sbe, mem_sbm):
    # torch: emb.permute(1,2,0).bmm(persona_input_mem.transpose(0,1)).permute(2,0,1)
    return jnp.einsum("sbe,sbm->mbe", emb_sbe, mem_sbm,
                      precision=jax.lax.Precision.HIGHEST)


if __name__ == "__main__":
    # Small deterministic shapes (B=16 so the batch grid has 2 pipelined steps).
    V = 64       # vocab
    E = 128      # model dim (lane-dense output)
    S = 16       # persona sequence length
    B = 16       # batch
    M = 8        # memory slots in persona_input_mem
    pad_idx = 0

    key = jax.random.PRNGKey(0)
    k_tab, k_tok, k_mem = jax.random.split(key, 3)

    emb_table = 0.02 * jax.random.normal(k_tab, (V, E), jnp.float32)
    emb_table = emb_table.at[pad_idx].set(0.0)

    persona = jax.random.randint(k_tok, (S, B), 1, V, dtype=jnp.int32)
    lens = jnp.array([S - (i % 5) for i in range(B)], dtype=jnp.int32)   # per-batch lengths
    persona_pad_mask = jnp.arange(S)[None, :] >= lens[:, None]           # (B, S) True = pad
    persona = jnp.where(persona_pad_mask.T, pad_idx, persona)

    # attention-like memory weights over the sequence dim
    persona_input_mem = jax.nn.softmax(
        jax.random.normal(k_mem, (S, B, M), jnp.float32), axis=0)

    # emb -> encoder (injected submodules, stand-ins in glue)
    x = emb_standin(persona, persona_pad_mask, emb_table)
    x = encoder_standin(x, persona_pad_mask)

    ref = mem_output_reference(x, persona_input_mem)

    # 1) f32 feed with HIGHEST precision (tight numerics check)
    out_f32 = jax.block_until_ready(
        mem_output(x, persona_input_mem,
                   feed_dtype=jnp.float32, precision=jax.lax.Precision.HIGHEST))
    assert out_f32.shape == (M, B, E)
    assert jnp.allclose(out_f32, ref, atol=1e-4, rtol=1e-4), "f32 path mismatch vs reference"

    # 2) default path: bf16 MXU feed (in-VMEM cast), f32 accumulation
    out_bf = jax.block_until_ready(mem_output(x, persona_input_mem))
    assert out_bf.shape == (M, B, E)
    assert jnp.allclose(out_bf, ref, atol=5e-2, rtol=5e-2), "bf16-feed path mismatch vs reference"

    # 3) producer-side bf16 emb (halves HBM read traffic on the dominant tensor)
    out_bf_in = jax.block_until_ready(
        mem_output(x.astype(jnp.bfloat16), persona_input_mem))
    assert jnp.allclose(out_bf_in, ref, atol=5e-2, rtol=5e-2), "bf16-input path mismatch"

    print("KERNEL_OK")
</pallas_src>

<mosaic_0001>
module attributes {stable_mosaic.version = 11 : i64} {
  func.func @_mem_output_kernel(%arg0: i32, %arg1: memref<16x8x128xf32, #tpu.memory_space<vmem>>, %arg2: memref<16x8x8xf32, #tpu.memory_space<vmem>>, %arg3: memref<8x8x128xf32, #tpu.memory_space<vmem>>) attributes {dimension_semantics = [#tpu.dimension_semantics<parallel>], iteration_bounds = array<i64: 2>, scalar_prefetch = 0 : i64, scratch_operands = 0 : i64, tpu.core_type = #tpu.core_type<tc>, window_params = [{transform_indices = @transform_0, window_bounds = array<i64: 16, 8, 128>}, {transform_indices = @transform_1, window_bounds = array<i64: 16, 8, 8>}, {transform_indices = @transform_2, window_bounds = array<i64: 8, 8, 128>}]} {
    %c0 = arith.constant 0 : index
    %c0_0 = arith.constant 0 : index
    %c0_1 = arith.constant 0 : index
    %0 = vector.load %arg1[%c0, %c0_0, %c0_1] : memref<16x8x128xf32, #tpu.memory_space<vmem>>, vector<16x1x128xf32>
    %1 = vector.shape_cast %0 : vector<16x1x128xf32> to vector<16x128xf32>
    %c0_2 = arith.constant 0 : index
    %c0_3 = arith.constant 0 : index
    %c0_4 = arith.constant 0 : index
    %2 = vector.load %arg2[%c0_2, %c0_3, %c0_4] : memref<16x8x8xf32, #tpu.memory_space<vmem>>, vector<16x1x8xf32>
    %3 = vector.shape_cast %2 : vector<16x1x8xf32> to vector<16x8xf32>
    %4 = tpu.transpose %3, [1, 0] : vector<16x8xf32> -> vector<8x16xf32>
    %cst = arith.constant dense<0.000000e+00> : vector<8x128xf32>
    %5 = tpu.matmul %4, %1, %cst {dimension_numbers = #tpu.dot_dimension_numbers<[1], [0], [0], [1], [0, 0, 1, 1], [], []>, precision = #tpu.contract_precision<fp32>} : vector<8x16xf32>, vector<16x128xf32>, vector<8x128xf32> -> vector<8x128xf32>
    %c0_5 = arith.constant 0 : index
    %c0_6 = arith.constant 0 : index
    %c0_7 = arith.constant 0 : index
    %6 = vector.load %arg3[%c0_5, %c0_6, %c0_7] : memref<8x8x128xf32, #tpu.memory_space<vmem>>, vector<8x1x128xf32>
    %7 = vector.shape_cast %6 : vector<8x1x128xf32> to vector<8x128xf32>
    %8 = vector.shape_cast %5 : vector<8x128xf32> to vector<8x1x128xf32>
    tpu.vector_store %arg3[%c0_5, %c0_6, %c0_7], %8 {strides = array<i32>} : memref<8x8x128xf32, #tpu.memory_space<vmem>>, vector<8x1x128xf32>,
    %c0_8 = arith.constant 0 : index
    %c1 = arith.constant 1 : index
    %c0_9 = arith.constant 0 : index
    %9 = vector.load %arg1[%c0_8, %c1, %c0_9] : memref<16x8x128xf32, #tpu.memory_space<vmem>>, vector<16x1x128xf32>
    %10 = vector.shape_cast %9 : vector<16x1x128xf32> to vector<16x128xf32>
    %c0_10 = arith.constant 0 : index
    %c1_11 = arith.constant 1 : index
    %c0_12 = arith.constant 0 : index
    %11 = vector.load %arg2[%c0_10, %c1_11, %c0_12] : memref<16x8x8xf32, #tpu.memory_space<vmem>>, vector<16x1x8xf32>
    %12 = vector.shape_cast %11 : vector<16x1x8xf32> to vector<16x8xf32>
    %13 = tpu.transpose %12, [1, 0] : vector<16x8xf32> -> vector<8x16xf32>
    %cst_13 = arith.constant dense<0.000000e+00> : vector<8x128xf32>
    %14 = tpu.matmul %13, %10, %cst_13 {dimension_numbers = #tpu.dot_dimension_numbers<[1], [0], [0], [1], [0, 0, 1, 1], [], []>, precision = #tpu.contract_precision<fp32>} : vector<8x16xf32>, vector<16x128xf32>, vector<8x128xf32> -> vector<8x128xf32>
    %c0_14 = arith.constant 0 : index
    %c1_15 = arith.constant 1 : index
    %c0_16 = arith.constant 0 : index
    %15 = vector.load %arg3[%c0_14, %c1_15, %c0_16] : memref<8x8x128xf32, #tpu.memory_space<vmem>>, vector<8x1x128xf32>
    %16 = vector.shape_cast %15 : vector<8x1x128xf32> to vector<8x128xf32>
    %17 = vector.shape_cast %14 : vector<8x128xf32> to vector<8x1x128xf32>
    tpu.vector_store %arg3[%c0_14, %c1_15, %c0_16], %17 {strides = array<i32>} : memref<8x8x128xf32, #tpu.memory_space<vmem>>, vector<8x1x128xf32>,
    %c0_17 = arith.constant 0 : index
    %c2 = arith.constant 2 : index
    %c0_18 = arith.constant 0 : index
    %18 = vector.load %arg1[%c0_17, %c2, %c0_18] : memref<16x8x128xf32, #tpu.memory_space<vmem>>, vector<16x1x128xf32>
    %19 = vector.shape_cast %18 : vector<16x1x128xf32> to vector<16x128xf32>
    %c0_19 = arith.constant 0 : index
    %c2_20 = arith.constant 2 : index
    %c0_21 = arith.constant 0 : index
    %20 = vector.load %arg2[%c0_19, %c2_20, %c0_21] : memref<16x8x8xf32, #tpu.memory_space<vmem>>, vector<16x1x8xf32>
    %21 = vector.shape_cast %20 : vector<16x1x8xf32> to vector<16x8xf32>
    %22 = tpu.transpose %21, [1, 0] : vector<16x8xf32> -> vector<8x16xf32>
    %cst_22 = arith.constant dense<0.000000e+00> : vector<8x128xf32>
    %23 = tpu.matmul %22, %19, %cst_22 {dimension_numbers = #tpu.dot_dimension_numbers<[1], [0], [0], [1], [0, 0, 1, 1], [], []>, precision = #tpu.contract_precision<fp32>} : vector<8x16xf32>, vector<16x128xf32>, vector<8x128xf32> -> vector<8x128xf32>
    %c0_23 = arith.constant 0 : index
    %c2_24 = arith.constant 2 : index
    %c0_25 = arith.constant 0 : index
    %24 = vector.load %arg3[%c0_23, %c2_24, %c0_25] : memref<8x8x128xf32, #tpu.memory_space<vmem>>, vector<8x1x128xf32>
    %25 = vector.shape_cast %24 : vector<8x1x128xf32> to vector<8x128xf32>
    %26 = vector.shape_cast %23 : vector<8x128xf32> to vector<8x1x128xf32>
    tpu.vector_store %arg3[%c0_23, %c2_24, %c0_25], %26 {strides = array<i32>} : memref<8x8x128xf32, #tpu.memory_space<vmem>>, vector<8x1x128xf32>,
    %c0_26 = arith.constant 0 : index
    %c3 = arith.constant 3 : index
    %c0_27 = arith.constant 0 : index
    %27 = vector.load %arg1[%c0_26, %c3, %c0_27] : memref<16x8x128xf32, #tpu.memory_space<vmem>>, vector<16x1x128xf32>
    %28 = vector.shape_cast %27 : vector<16x1x128xf32> to vector<16x128xf32>
    %c0_28 = arith.constant 0 : index
    %c3_29 = arith.constant 3 : index
    %c0_30 = arith.constant 0 : index
    %29 = vector.load %arg2[%c0_28, %c3_29, %c0_30] : memref<16x8x8xf32, #tpu.memory_space<vmem>>, vector<16x1x8xf32>
    %30 = vector.shape_cast %29 : vector<16x1x8xf32> to vector<16x8xf32>
    %31 = tpu.transpose %30, [1, 0] : vector<16x8xf32> -> vector<8x16xf32>
    %cst_31 = arith.constant dense<0.000000e+00> : vector<8x128xf32>
    %32 = tpu.matmul %31, %28, %cst_31 {dimension_numbers = #tpu.dot_dimension_numbers<[1], [0], [0], [1], [0, 0, 1, 1], [], []>, precision = #tpu.contract_precision<fp32>} : vector<8x16xf32>, vector<16x128xf32>, vector<8x128xf32> -> vector<8x128xf32>
    %c0_32 = arith.constant 0 : index
    %c3_33 = arith.constant 3 : index
    %c0_34 = arith.constant 0 : index
    %33 = vector.load %arg3[%c0_32, %c3_33, %c0_34] : memref<8x8x128xf32, #tpu.memory_space<vmem>>, vector<8x1x128xf32>
    %34 = vector.shape_cast %33 : vector<8x1x128xf32> to vector<8x128xf32>
    %35 = vector.shape_cast %32 : vector<8x128xf32> to vector<8x1x128xf32>
    tpu.vector_store %arg3[%c0_32, %c3_33, %c0_34], %35 {strides = array<i32>} : memref<8x8x128xf32, #tpu.memory_space<vmem>>, vector<8x1x128xf32>,
    %c0_35 = arith.constant 0 : index
    %c4 = arith.constant 4 : index
    %c0_36 = arith.constant 0 : index
    %36 = vector.load %arg1[%c0_35, %c4, %c0_36] : memref<16x8x128xf32, #tpu.memory_space<vmem>>, vector<16x1x128xf32>
    %37 = vector.shape_cast %36 : vector<16x1x128xf32> to vector<16x128xf32>
    %c0_37 = arith.constant 0 : index
    %c4_38 = arith.constant 4 : index
    %c0_39 = arith.constant 0 : index
    %38 = vector.load %arg2[%c0_37, %c4_38, %c0_39] : memref<16x8x8xf32, #tpu.memory_space<vmem>>, vector<16x1x8xf32>
    %39 = vector.shape_cast %38 : vector<16x1x8xf32> to vector<16x8xf32>
    %40 = tpu.transpose %39, [1, 0] : vector<16x8xf32> -> vector<8x16xf32>
    %cst_40 = arith.constant dense<0.000000e+00> : vector<8x128xf32>
    %41 = tpu.matmul %40, %37, %cst_40 {dimension_numbers = #tpu.dot_dimension_numbers<[1], [0], [0], [1], [0, 0, 1, 1], [], []>, precision = #tpu.contract_precision<fp32>} : vector<8x16xf32>, vector<16x128xf32>, vector<8x128xf32> -> vector<8x128xf32>
    %c0_41 = arith.constant 0 : index
    %c4_42 = arith.constant 4 : index
    %c0_43 = arith.constant 0 : index
    %42 = vector.load %arg3[%c0_41, %c4_42, %c0_43] : memref<8x8x128xf32, #tpu.memory_space<vmem>>, vector<8x1x128xf32>
    %43 = vector.shape_cast %42 : vector<8x1x128xf32> to vector<8x128xf32>
    %44 = vector.shape_cast %41 : vector<8x128xf32> to vector<8x1x128xf32>
    tpu.vector_store %arg3[%c0_41, %c4_42, %c0_43], %44 {strides = array<i32>} : memref<8x8x128xf32, #tpu.memory_space<vmem>>, vector<8x1x128xf32>,
    %c0_44 = arith.constant 0 : index
    %c5 = arith.constant 5 : index
    %c0_45 = arith.constant 0 : index
    %45 = vector.load %arg1[%c0_44, %c5, %c0_45] : memref<16x8x128xf32, #tpu.memory_space<vmem>>, vector<16x1x128xf32>
    %46 = vector.shape_cast %45 : vector<16x1x128xf32> to vector<16x128xf32>
    %c0_46 = arith.constant 0 : index
    %c5_47 = arith.constant 5 : index
    %c0_48 = arith.constant 0 : index
    %47 = vector.load %arg2[%c0_46, %c5_47, %c0_48] : memref<16x8x8xf32, #tpu.memory_space<vmem>>, vector<16x1x8xf32>
    %48 = vector.shape_cast %47 : vector<16x1x8xf32> to vector<16x8xf32>
    %49 = tpu.transpose %48, [1, 0] : vector<16x8xf32> -> vector<8x16xf32>
    %cst_49 = arith.constant dense<0.000000e+00> : vector<8x128xf32>
    %50 = tpu.matmul %49, %46, %cst_49 {dimension_numbers = #tpu.dot_dimension_numbers<[1], [0], [0], [1], [0, 0, 1, 1], [], []>, precision = #tpu.contract_precision<fp32>} : vector<8x16xf32>, vector<16x128xf32>, vector<8x128xf32> -> vector<8x128xf32>
    %c0_50 = arith.constant 0 : index
    %c5_51 = arith.constant 5 : index
    %c0_52 = arith.constant 0 : index
    %51 = vector.load %arg3[%c0_50, %c5_51, %c0_52] : memref<8x8x128xf32, #tpu.memory_space<vmem>>, vector<8x1x128xf32>
    %52 = vector.shape_cast %51 : vector<8x1x128xf32> to vector<8x128xf32>
    %53 = vector.shape_cast %50 : vector<8x128xf32> to vector<8x1x128xf32>
    tpu.vector_store %arg3[%c0_50, %c5_51, %c0_52], %53 {strides = array<i32>} : memref<8x8x128xf32, #tpu.memory_space<vmem>>, vector<8x1x128xf32>,
    %c0_53 = arith.constant 0 : index
    %c6 = arith.constant 6 : index
    %c0_54 = arith.constant 0 : index
    %54 = vector.load %arg1[%c0_53, %c6, %c0_54] : memref<16x8x128xf32, #tpu.memory_space<vmem>>, vector<16x1x128xf32>
    %55 = vector.shape_cast %54 : vector<16x1x128xf32> to vector<16x128xf32>
    %c0_55 = arith.constant 0 : index
    %c6_56 = arith.constant 6 : index
    %c0_57 = arith.constant 0 : index
    %56 = vector.load %arg2[%c0_55, %c6_56, %c0_57] : memref<16x8x8xf32, #tpu.memory_space<vmem>>, vector<16x1x8xf32>
    %57 = vector.shape_cast %56 : vector<16x1x8xf32> to vector<16x8xf32>
    %58 = tpu.transpose %57, [1, 0] : vector<16x8xf32> -> vector<8x16xf32>
    %cst_58 = arith.constant dense<0.000000e+00> : vector<8x128xf32>
    %59 = tpu.matmul %58, %55, %cst_58 {dimension_numbers = #tpu.dot_dimension_numbers<[1], [0], [0], [1], [0, 0, 1, 1], [], []>, precision = #tpu.contract_precision<fp32>} : vector<8x16xf32>, vector<16x128xf32>, vector<8x128xf32> -> vector<8x128xf32>
    %c0_59 = arith.constant 0 : index
    %c6_60 = arith.constant 6 : index
    %c0_61 = arith.constant 0 : index
    %60 = vector.load %arg3[%c0_59, %c6_60, %c0_61] : memref<8x8x128xf32, #tpu.memory_space<vmem>>, vector<8x1x128xf32>
    %61 = vector.shape_cast %60 : vector<8x1x128xf32> to vector<8x128xf32>
    %62 = vector.shape_cast %59 : vector<8x128xf32> to vector<8x1x128xf32>
    tpu.vector_store %arg3[%c0_59, %c6_60, %c0_61], %62 {strides = array<i32>} : memref<8x8x128xf32, #tpu.memory_space<vmem>>, vector<8x1x128xf32>,
    %c0_62 = arith.constant 0 : index
    %c7 = arith.constant 7 : index
    %c0_63 = arith.constant 0 : index
    %63 = vector.load %arg1[%c0_62, %c7, %c0_63] : memref<16x8x128xf32, #tpu.memory_space<vmem>>, vector<16x1x128xf32>
    %64 = vector.shape_cast %63 : vector<16x1x128xf32> to vector<16x128xf32>
    %c0_64 = arith.constant 0 : index
    %c7_65 = arith.constant 7 : index
    %c0_66 = arith.constant 0 : index
    %65 = vector.load %arg2[%c0_64, %c7_65, %c0_66] : memref<16x8x8xf32, #tpu.memory_space<vmem>>, vector<16x1x8xf32>
    %66 = vector.shape_cast %65 : vector<16x1x8xf32> to vector<16x8xf32>
    %67 = tpu.transpose %66, [1, 0] : vector<16x8xf32> -> vector<8x16xf32>
    %cst_67 = arith.constant dense<0.000000e+00> : vector<8x128xf32>
    %68 = tpu.matmul %67, %64, %cst_67 {dimension_numbers = #tpu.dot_dimension_numbers<[1], [0], [0], [1], [0, 0, 1, 1], [], []>, precision = #tpu.contract_precision<fp32>} : vector<8x16xf32>, vector<16x128xf32>, vector<8x128xf32> -> vector<8x128xf32>
    %c0_68 = arith.constant 0 : index
    %c7_69 = arith.constant 7 : index
    %c0_70 = arith.constant 0 : index
    %69 = vector.load %arg3[%c0_68, %c7_69, %c0_70] : memref<8x8x128xf32, #tpu.memory_space<vmem>>, vector<8x1x128xf32>
    %70 = vector.shape_cast %69 : vector<8x1x128xf32> to vector<8x128xf32>
    %71 = vector.shape_cast %68 : vector<8x128xf32> to vector<8x1x128xf32>
    tpu.vector_store %arg3[%c0_68, %c7_69, %c0_70], %71 {strides = array<i32>} : memref<8x8x128xf32, #tpu.memory_space<vmem>>, vector<8x1x128xf32>,
    return
  }
  func.func @transform_0(%arg0: i32) -> (i32, i32, i32) {
    %c0_i32 = arith.constant 0 : i32
    %c0_i32_0 = arith.constant 0 : i32
    %c0_i32_1 = arith.constant 0 : i32
    return %c0_i32, %arg0, %c0_i32_0 : i32, i32, i32
  }
  func.func @transform_1(%arg0: i32) -> (i32, i32, i32) {
    %c0_i32 = arith.constant 0 : i32
    %c0_i32_0 = arith.constant 0 : i32
    %c0_i32_1 = arith.constant 0 : i32
    return %c0_i32, %arg0, %c0_i32_0 : i32, i32, i32
  }
  func.func @transform_2(%arg0: i32) -> (i32, i32, i32) {
    %c0_i32 = arith.constant 0 : i32
    %c0_i32_0 = arith.constant 0 : i32
    %c0_i32_1 = arith.constant 0 : i32
    return %c0_i32, %arg0, %c0_i32_0 : i32, i32, i32
  }
}

</mosaic_0001>

<bundles_post_ra>
// kernel: tpu_custom_call.1
= control target key start
LH: loop header
LB: loop body
LE: loop exit
PB: predicated region body
PF: predicated region fallthrough
CT: control target
= control target key end

     0   :  { %7 = vsyncpa [#allocation5], 0  ;;  %s8010_s0 = inlined_call_operand.vmem [shape: f32[16,16,128], index: 0, kind: input, shape index: {}]   ;;  %s8011_s1 = inlined_call_operand.vmem [shape: f32[16,16,8], index: 1, kind: input, shape index: {}]   ;;  %s8012_s2 = inlined_call_operand.hbm [shape: f32[8,16,128], index: 2, kind: output, shape index: {}]  }
   0x1   :  { %9 = vsyncpa [#allocation5 + $0x1], 0  ;;  %s6813_s9 = smov 0   ;;  %s6815_s10 = smov 0  }
   0x2   :  { %s6817_s11 = smov 0   ;;  %s6819_s12 = smov 0  }
   0x3 LB: > { %s5928_s13 = sadd.s32 4294967295, %s6788_s12   ;;  %s5929_s14 = sadd.s32 4294967294, %s6788_s12   ;;  %s6788_s12 = sphi %s6819_s12, %s8019_s12   ;;  %s6784_s11 = sphi %s6817_s11, %s8018_s11   ;;  %s6780_s10 = sphi %s6815_s10, %s8017_s10   ;;  %s6776_s9 = sphi %s6813_s9, %s8016_s9  }
   0x4   : > { %s6836_s15 = sadd.s32 1, %s6788_s12   ;;  %s22_s16 = sadd.s32 1, %s6784_s11 }
   0x5   : > { %s19_s17 = ssub.s32 %s6788_s12, %s6836_s15  ;;  %p29_p0 = scmp.ne.s32.totalorder %s6784_s11, %s6780_s10 }
   0x6   : > { %p20_p1 = scmp.eq.s32.totalorder %s19_s17, 0  ;;  %p30_p2 = scmp.eq.s32.totalorder %s6788_s12, 0 }
   0x7   : > { %p85_p3 = scmp.eq.s32.totalorder %s5928_s13, 1  ;;  %p90_p4 = scmp.ne.s32.totalorder %s6780_s10, %s6776_s9 }
   0x8   : > { %s6849_s18 = scalar_select %p20_p1, %s6784_s11, %s22_s16  }
   0x9   : > { %p6851_p5 = por %p30_p2, %p29_p0  ;;  %p6855_p6 = por %p85_p3, %p29_p0 }
   0xa   : > { %p91_p7 = scmp.eq.s32.totalorder %s5929_s14, 1  ;;  %p5931_p9 = scmp.ge.s32.totalorder %s6788_s12, 2 }
   0xc   : > { %p6859_p8 = por %p91_p7, %p90_p4  ;;  %107 = sbr.rel (%p5931_p9) target bundleno = 43 (0x2b), region = 16 }
  0x13   : > { %110 = sbr.rel (!%p6851_p5) target bundleno = 31 (0x1f), region = 20  ;;  %s112_s22 = sand.u32 (%p6851_p5), 1, %s6784_s11  }
  0x14   : > { %s5933_s23 = sshll.u32 (%p6851_p5), %s6788_s12, 3  ;;  %s5932_s24 = sshll.u32 (%p6851_p5), %s112_s22, 7 }
  0x15   : > { %s6873_s27 = scalar_lea.vmem (%p6851_p5), %s8010_s0, %s5933_s23  ;;  %s114_s28 = scalar_lea.vmem (%p6851_p5), [#allocation2], %s5932_s24 }
  0x16   : > { %v174_v0 = vld [vmem:[%s6873_s27] sm:$0xff] (%p6851_p5)  ;;  %v176_v1 = vld [vmem:[%s6873_s27 + $0x10] sm:$0xff] (%p6851_p5) }
  0x17   : > { %v178_v2 = vld [vmem:[%s6873_s27 + $0x20] sm:$0xff] (%p6851_p5)  ;;  %175 = vst [vmem:[%s114_s28] sm:$0xff] (%p6851_p5), %v174_v0  ;;  %177 = vst [vmem:[%s114_s28 + $0x8] sm:$0xff] (%p6851_p5), %v176_v1  ;;  %v180_v3 = vld [vmem:[%s6873_s27 + $0x30] sm:$0xff] (%p6851_p5) }
  0x18   : > { %179 = vst [vmem:[%s114_s28 + $0x10] sm:$0xff] (%p6851_p5), %v178_v2  ;;  %v182_v4 = vld [vmem:[%s6873_s27 + $0x40] sm:$0xff] (%p6851_p5)  ;;  %v184_v5 = vld [vmem:[%s6873_s27 + $0x50] sm:$0xff] (%p6851_p5)  ;;  %181 = vst [vmem:[%s114_s28 + $0x18] sm:$0xff] (%p6851_p5), %v180_v3 }
  0x19   : > { %183 = vst [vmem:[%s114_s28 + $0x20] sm:$0xff] (%p6851_p5), %v182_v4  ;;  %185 = vst [vmem:[%s114_s28 + $0x28] sm:$0xff] (%p6851_p5), %v184_v5  ;;  %v186_v6 = vld [vmem:[%s6873_s27 + $0x60] sm:$0xff] (%p6851_p5)  ;;  %v188_v7 = vld [vmem:[%s6873_s27 + $0x70] sm:$0xff] (%p6851_p5) }
  0x1a   : > { %v190_v8 = vld [vmem:[%s6873_s27 + $0x80] sm:$0xff]  ;;  %187 = vst [vmem:[%s114_s28 + $0x30] sm:$0xff] %v186_v6  ;;  %189 = vst [vmem:[%s114_s28 + $0x38] sm:$0xff] %v188_v7  ;;  %v192_v9 = vld [vmem:[%s6873_s27 + $0x90] sm:$0xff] }
  0x1b   : > { %191 = vst [vmem:[%s114_s28 + $0x40] sm:$0xff] %v190_v8  ;;  %v194_v10 = vld [vmem:[%s6873_s27 + $0xa0] sm:$0xff]  ;;  %v196_v11 = vld [vmem:[%s6873_s27 + $0xb0] sm:$0xff]  ;;  %193 = vst [vmem:[%s114_s28 + $0x48] sm:$0xff] %v192_v9 }
  0x1c   : > { %195 = vst [vmem:[%s114_s28 + $0x50] sm:$0xff] %v194_v10  ;;  %197 = vst [vmem:[%s114_s28 + $0x58] sm:$0xff] %v196_v11  ;;  %v198_v12 = vld [vmem:[%s6873_s27 + $0xc0] sm:$0xff]  ;;  %v200_v13 = vld [vmem:[%s6873_s27 + $0xd0] sm:$0xff] }
  0x1d   : > { %v202_v14 = vld [vmem:[%s6873_s27 + $0xe0] sm:$0xff]  ;;  %199 = vst [vmem:[%s114_s28 + $0x60] sm:$0xff] %v198_v12  ;;  %201 = vst [vmem:[%s114_s28 + $0x68] sm:$0xff] %v200_v13  ;;  %v204_v15 = vld [vmem:[%s6873_s27 + $0xf0] sm:$0xff] }
  0x1e   : > { %203 = vst [vmem:[%s114_s28 + $0x70] sm:$0xff] %v202_v14  ;;  %205 = vst [vmem:[%s114_s28 + $0x78] sm:$0xff] %v204_v15 }
  0x1f PF: > { %211 = sbr.rel (!%p6851_p5) target bundleno = 43 (0x2b), region = 58  ;;  %s213_s29 = sand.u32 (%p6851_p5), 1, %s6784_s11  }
  0x20   : > { %s5935_s30 = sshll.u32 (%p6851_p5), %s6788_s12, 3  ;;  %s5934_s3 = sshll.u32 (%p6851_p5), %s213_s29, 7 }
  0x21   : > { %s6898_s6 = scalar_lea.vmem (%p6851_p5), %s8011_s1, %s5935_s30  ;;  %s215_s7 = scalar_lea.vmem (%p6851_p5), [#allocation3], %s5934_s3 }
  0x22   : > { %v275_v16 = vld [vmem:[%s6898_s6] sm:$0xff] (%p6851_p5)  ;;  %v277_v17 = vld [vmem:[%s6898_s6 + $0x10] sm:$0xff] (%p6851_p5) }
  0x23   : > { %v279_v18 = vld [vmem:[%s6898_s6 + $0x20] sm:$0xff] (%p6851_p5)  ;;  %276 = vst [vmem:[%s215_s7] sm:$0xff] (%p6851_p5), %v275_v16  ;;  %278 = vst [vmem:[%s215_s7 + $0x8] sm:$0xff] (%p6851_p5), %v277_v17  ;;  %v281_v19 = vld [vmem:[%s6898_s6 + $0x30] sm:$0xff] (%p6851_p5) }
  0x24   : > { %280 = vst [vmem:[%s215_s7 + $0x10] sm:$0xff] (%p6851_p5), %v279_v18  ;;  %v283_v20 = vld [vmem:[%s6898_s6 + $0x40] sm:$0xff] (%p6851_p5)  ;;  %v285_v21 = vld [vmem:[%s6898_s6 + $0x50] sm:$0xff] (%p6851_p5)  ;;  %282 = vst [vmem:[%s215_s7 + $0x18] sm:$0xff] (%p6851_p5), %v281_v19 }
  0x25   : > { %284 = vst [vmem:[%s215_s7 + $0x20] sm:$0xff] (%p6851_p5), %v283_v20  ;;  %286 = vst [vmem:[%s215_s7 + $0x28] sm:$0xff] (%p6851_p5), %v285_v21  ;;  %v287_v22 = vld [vmem:[%s6898_s6 + $0x60] sm:$0xff] (%p6851_p5)  ;;  %v289_v23 = vld [vmem:[%s6898_s6 + $0x70] sm:$0xff] (%p6851_p5) }
  0x26   : > { %v291_v24 = vld [vmem:[%s6898_s6 + $0x80] sm:$0xff]  ;;  %288 = vst [vmem:[%s215_s7 + $0x30] sm:$0xff] %v287_v22  ;;  %290 = vst [vmem:[%s215_s7 + $0x38] sm:$0xff] %v289_v23  ;;  %v293_v25 = vld [vmem:[%s6898_s6 + $0x90] sm:$0xff] }
  0x27   : > { %292 = vst [vmem:[%s215_s7 + $0x40] sm:$0xff] %v291_v24  ;;  %v295_v26 = vld [vmem:[%s6898_s6 + $0xa0] sm:$0xff]  ;;  %v297_v27 = vld [vmem:[%s6898_s6 + $0xb0] sm:$0xff]  ;;  %294 = vst [vmem:[%s215_s7 + $0x48] sm:$0xff] %v293_v25 }
  0x28   : > { %296 = vst [vmem:[%s215_s7 + $0x50] sm:$0xff] %v295_v26  ;;  %298 = vst [vmem:[%s215_s7 + $0x58] sm:$0xff] %v297_v27  ;;  %v299_v28 = vld [vmem:[%s6898_s6 + $0xc0] sm:$0xff]  ;;  %v301_v29 = vld [vmem:[%s6898_s6 + $0xd0] sm:$0xff] }
  0x29   : > { %v303_v30 = vld [vmem:[%s6898_s6 + $0xe0] sm:$0xff]  ;;  %300 = vst [vmem:[%s215_s7 + $0x60] sm:$0xff] %v299_v28  ;;  %302 = vst [vmem:[%s215_s7 + $0x68] sm:$0xff] %v301_v29  ;;  %v305_v31 = vld [vmem:[%s6898_s6 + $0xf0] sm:$0xff] }
  0x2a   : > { %304 = vst [vmem:[%s215_s7 + $0x70] sm:$0xff] %v303_v30  ;;  %306 = vst [vmem:[%s215_s7 + $0x78] sm:$0xff] %v305_v31 }
  0x2b PF: > { %p5936_p10 = scmp.ge.s32.totalorder %s6788_s12, 1  ;;  %p311_p11 = scmp.lt.s32.totalorder %s6788_s12, 3 }
  0x2d   : > { %p312_p12 = pnand %p5936_p10, %p311_p11 }
  0x2e   : > { %s6919_s8 = sand.u32 (!%p312_p12), 1, %s6780_s10   ;;  %vm399_vm0 = vcmask (!%p312_p12), 1041409   ;;  %vm402_vm1 = vcmask (!%p312_p12), 1042434   ;;  %vm405_vm2 = vcmask (!%p312_p12), 1043459   ;;  %vm408_vm3 = vcmask (!%p312_p12), 1044484   ;;  %s5973_s23 = sshll.u32 (!%p312_p12), %s5928_s13, 7 }
  0x2f   : > { %315 = sbr.rel (%p312_p12) target bundleno = 618 (0x26a), region = 96  ;;  %s5937_s14 = sshll.u32 (!%p312_p12), %s6919_s8, 7  ;;  %vm411_vm4 = vcmask (!%p312_p12), 1045509   ;;  %vm414_vm5 = vcmask (!%p312_p12), 1046534   ;;  %vm417_vm6 = vcmask (!%p312_p12), 1047559   ;;  %vm6791_vm7 = vmmov (!%p312_p12), 0  }
  0x30   : > { %s6924_s16 = scalar_lea.vmem (!%p312_p12), [#allocation3], %s5937_s14  ;;  %s7158_s17 = scalar_lea.vmem (!%p312_p12), [#allocation2], %s5937_s14  ;;  %vm513_vm8 = vcmask (!%p312_p12), 130048  }
  0x31   : > { %v1058_v32 = vld [vmem:[%s6924_s16 + $0x1] sm:$0x1] (!%p312_p12)  ;;  %v1059_v33 = vld [vmem:[%s6924_s16 + $0x9] sm:$0x1] (!%p312_p12)  ;;  %v1060_v34 = vld [vmem:[%s6924_s16 + $0x11] sm:$0x1] (!%p312_p12)  ;;  %s7960_s26 = scalar_lea.hbm (!%p312_p12), %s8012_s2, %s5973_s23 }
  0x32   : > { %v1061_v35 = vld [vmem:[%s6924_s16 + $0x19] sm:$0x1] (!%p312_p12)  ;;  %v1062_v36 = vld [vmem:[%s6924_s16 + $0x21] sm:$0x1] (!%p312_p12)  ;;  %v1063_v37 = vld [vmem:[%s6924_s16 + $0x29] sm:$0x1] (!%p312_p12) }
  0x33   : > { %v1064_v38 = vld [vmem:[%s6924_s16 + $0x31] sm:$0x1] (!%p312_p12)  ;;  %v1065_v39 = vld [vmem:[%s6924_s16 + $0x39] sm:$0x1] (!%p312_p12)  ;;  %v1090_v40 = vrot.slane (!%p312_p12), %v1059_v33, 7  ;;  %v1092_v41 = vrot.slane (!%p312_p12), %v1060_v34, 6 }
  0x34   : > { %v1094_v42 = vrot.slane (!%p312_p12), %v1061_v35, 5  ;;  %v1096_v43 = vrot.slane (!%p312_p12), %v1062_v36, 4  ;;  %v1098_v44 = vrot.slane (!%p312_p12), %v1063_v37, 3  ;;  %v366_v45 = vld [vmem:[%s6924_s16] sm:$0x1] (!%p312_p12)  ;;  %v1100_v47 = vrot.slane (!%p312_p12), %v1064_v38, 2 }
  0x35   : > { %v1091_v46 = vsel (!%p312_p12), %vm399_vm0, %v1090_v40, %v1058_v32  ;;  %v1102_v48 = vrot.slane (!%p312_p12), %v1065_v39, 1  ;;  %v367_v49 = vld [vmem:[%s6924_s16 + $0x8] sm:$0x1] (!%p312_p12)  ;;  %v368_v50 = vld [vmem:[%s6924_s16 + $0x10] sm:$0x1] (!%p312_p12)  ;;  %s5939_s19 = sshll.u32 (!%p312_p12), %s6919_s8, 6 }
  0x36   : > { %v1093_v51 = vsel %vm402_vm1, %v1092_v41, %v1091_v46  ;;  %v369_v52 = vld [vmem:[%s6924_s16 + $0x18] sm:$0x1]  ;;  %v370_v53 = vld [vmem:[%s6924_s16 + $0x20] sm:$0x1]  ;;  %v371_v54 = vld [vmem:[%s6924_s16 + $0x28] sm:$0x1] }
  0x37   : > { %v1095_v55 = vsel %vm405_vm2, %v1094_v42, %v1093_v51  ;;  %v372_v56 = vld [vmem:[%s6924_s16 + $0x30] sm:$0x1]  ;;  %v373_v57 = vld [vmem:[%s6924_s16 + $0x38] sm:$0x1]  ;;  %v398_v58 = vrot.slane %v367_v49, 7  ;;  %v401_v59 = vrot.slane %v368_v50, 6 }
  0x38   : > { %v1097_v60 = vsel %vm408_vm3, %v1096_v43, %v1095_v55  ;;  %v404_v61 = vrot.slane %v369_v52, 5  ;;  %v407_v62 = vrot.slane %v370_v53, 4  ;;  %v410_v63 = vrot.slane %v371_v54, 3  ;;  %v1066_v0 = vld [vmem:[%s6924_s16 + $0x41] sm:$0x1]  ;;  %s7847_s22 = scalar_lea.vmem [#allocation4], %s5939_s19 }
  0x39   : > { %v1099_v1 = vsel %vm411_vm4, %v1098_v44, %v1097_v60  ;;  %v400_v2 = vsel %vm399_vm0, %v398_v58, %v366_v45  ;;  %v413_v3 = vrot.slane %v372_v56, 2  ;;  %v416_v4 = vrot.slane %v373_v57, 1  ;;  %v1067_v5 = vld [vmem:[%s6924_s16 + $0x49] sm:$0x1]  ;;  %v1068_v6 = vld [vmem:[%s6924_s16 + $0x51] sm:$0x1] }
  0x3a   : > { %v1101_v7 = vsel %vm414_vm5, %v1100_v47, %v1099_v1  ;;  %v403_v8 = vsel %vm402_vm1, %v401_v59, %v400_v2  ;;  %v1069_v9 = vld [vmem:[%s6924_s16 + $0x59] sm:$0x1]  ;;  %v1070_v10 = vld [vmem:[%s6924_s16 + $0x61] sm:$0x1]  ;;  %v1071_v11 = vld [vmem:[%s6924_s16 + $0x69] sm:$0x1] }
  0x3b   : > { %v1103_v12 = vsel %vm417_vm6, %v1102_v48, %v1101_v7  ;;  %v406_v13 = vsel %vm405_vm2, %v404_v61, %v403_v8  ;;  %v1072_v14 = vld [vmem:[%s6924_s16 + $0x71] sm:$0x1]  ;;  %v1073_v15 = vld [vmem:[%s6924_s16 + $0x79] sm:$0x1]  ;;  %v1104_v16 = vrot.slane %v1067_v5, 7  ;;  %v1106_v17 = vrot.slane %v1068_v6, 6 }
  0x3c   : > { %1120 = vxpose.xlu1.b32.start [1/2] (short) (narrow) %v1103_v12, 8  ;;  %v409_v18 = vsel %vm408_vm3, %v407_v62, %v406_v13  ;;  %v1108_v19 = vrot.slane %v1069_v9, 5  ;;  %v1110_v20 = vrot.slane %v1070_v10, 4  ;;  %v1112_v21 = vrot.slane %v1071_v11, 3  ;;  %v374_v22 = vld [vmem:[%s6924_s16 + $0x40] sm:$0x1] }
  0x3d   : > { %v412_v23 = vsel %vm411_vm4, %v410_v63, %v409_v18  ;;  %v1105_v24 = vsel %vm399_vm0, %v1104_v16, %v1066_v0  ;;  %v1114_v25 = vrot.slane %v1072_v14, 2  ;;  %v1116_v26 = vrot.slane %v1073_v15, 1  ;;  %v375_v27 = vld [vmem:[%s6924_s16 + $0x48] sm:$0x1]  ;;  %v376_v28 = vld [vmem:[%s6924_s16 + $0x50] sm:$0x1] }
  0x3e   : > { %v415_v29 = vsel %vm414_vm5, %v413_v3, %v412_v23  ;;  %v1107_v30 = vsel %vm402_vm1, %v1106_v17, %v1105_v24  ;;  %v377_v31 = vld [vmem:[%s6924_s16 + $0x58] sm:$0x1]  ;;  %v378_v32 = vld [vmem:[%s6924_s16 + $0x60] sm:$0x1]  ;;  %v379_v33 = vld [vmem:[%s6924_s16 + $0x68] sm:$0x1] }
  0x3f   : > { %v418_v34 = vsel %vm417_vm6, %v416_v4, %v415_v29  ;;  %v1109_v35 = vsel %vm405_vm2, %v1108_v19, %v1107_v30  ;;  %v380_v36 = vld [vmem:[%s6924_s16 + $0x70] sm:$0x1]  ;;  %v381_v37 = vld [vmem:[%s6924_s16 + $0x78] sm:$0x1]  ;;  %v419_v38 = vrot.slane %v375_v27, 7  ;;  %v421_v39 = vrot.slane %v376_v28, 6 }
  0x40   : > { %435 = vxpose.xlu0.b32.start [1/2] (short) (narrow) %v418_v34, 8  ;;  %v1111_v40 = vsel %vm408_vm3, %v1110_v20, %v1109_v35  ;;  %v423_v41 = vrot.slane %v377_v31, 5  ;;  %v425_v42 = vrot.slane %v378_v32, 4  ;;  %v427_v43 = vrot.slane %v379_v33, 3  ;;  %v2426_v44 = vld [vmem:[%s6924_s16 + $0x3] sm:$0x1] }
  0x41   : > { %v1113_v45 = vsel %vm411_vm4, %v1112_v21, %v1111_v40  ;;  %v420_v46 = vsel %vm399_vm0, %v419_v38, %v374_v22  ;;  %v429_v47 = vrot.slane %v380_v36, 2  ;;  %v431_v48 = vrot.slane %v381_v37, 1  ;;  %v2427_v49 = vld [vmem:[%s6924_s16 + $0xb] sm:$0x1]  ;;  %v2428_v50 = vld [vmem:[%s6924_s16 + $0x13] sm:$0x1] }
  0x42   : > { %v1115_v51 = vsel %vm414_vm5, %v1114_v25, %v1113_v45  ;;  %v422_v52 = vsel %vm402_vm1, %v421_v39, %v420_v46  ;;  %v2429_v53 = vld [vmem:[%s6924_s16 + $0x1b] sm:$0x1]  ;;  %v2430_v54 = vld [vmem:[%s6924_s16 + $0x23] sm:$0x1]  ;;  %v2431_v55 = vld [vmem:[%s6924_s16 + $0x2b] sm:$0x1] }
  0x43   : > { %v1117_v56 = vsel %vm417_vm6, %v1116_v26, %v1115_v51  ;;  %v424_v57 = vsel %vm405_vm2, %v423_v41, %v422_v52  ;;  %v2432_v58 = vld [vmem:[%s6924_s16 + $0x33] sm:$0x1]  ;;  %v2433_v59 = vld [vmem:[%s6924_s16 + $0x3b] sm:$0x1]  ;;  %v2458_v60 = vrot.slane %v2427_v49, 7  ;;  %v2460_v61 = vrot.slane %v2428_v50, 6 }
  0x44   : > { %1121 = vxpose.xlu1.b32.end [2/2] (short) (narrow) %v1117_v56, 8  ;;  %v426_v62 = vsel %vm408_vm3, %v425_v42, %v424_v57  ;;  %v2462_v63 = vrot.slane %v2429_v53, 5  ;;  %v2464_v0 = vrot.slane %v2430_v54, 4  ;;  %v2466_v1 = vrot.slane %v2431_v55, 3  ;;  %v1742_v2 = vld [vmem:[%s6924_s16 + $0x2] sm:$0x1] }
  0x45   : > { %v428_v3 = vsel %vm411_vm4, %v427_v43, %v426_v62  ;;  %v2459_v4 = vsel %vm399_vm0, %v2458_v60, %v2426_v44  ;;  %v2468_v5 = vrot.slane %v2432_v58, 2  ;;  %v2470_v6 = vrot.slane %v2433_v59, 1  ;;  %v1743_v7 = vld [vmem:[%s6924_s16 + $0xa] sm:$0x1]  ;;  %v1744_v8 = vld [vmem:[%s6924_s16 + $0x12] sm:$0x1] }
  0x46   : > { %v430_v9 = vsel %vm414_vm5, %v429_v47, %v428_v3  ;;  %v2461_v10 = vsel %vm402_vm1, %v2460_v61, %v2459_v4  ;;  %v1745_v11 = vld [vmem:[%s6924_s16 + $0x1a] sm:$0x1]  ;;  %v1746_v12 = vld [vmem:[%s6924_s16 + $0x22] sm:$0x1]  ;;  %v1747_v13 = vld [vmem:[%s6924_s16 + $0x2a] sm:$0x1] }
  0x47   : > { %v432_v14 = vsel %vm417_vm6, %v431_v48, %v430_v9  ;;  %v2463_v15 = vsel %vm405_vm2, %v2462_v63, %v2461_v10  ;;  %v1748_v16 = vld [vmem:[%s6924_s16 + $0x32] sm:$0x1]  ;;  %v1749_v17 = vld [vmem:[%s6924_s16 + $0x3a] sm:$0x1]  ;;  %v1774_v18 = vrot.slane %v1743_v7, 7  ;;  %v1776_v19 = vrot.slane %v1744_v8, 6 }
  0x48   : > { %436 = vxpose.xlu0.b32.end [2/2] (short) (narrow) %v432_v14, 8  ;;  %v2465_v20 = vsel %vm408_vm3, %v2464_v0, %v2463_v15  ;;  %v1778_v21 = vrot.slane %v1745_v11, 5  ;;  %v1780_v22 = vrot.slane %v1746_v12, 4  ;;  %v1782_v23 = vrot.slane %v1747_v13, 3  ;;  %v2434_v24 = vld [vmem:[%s6924_s16 + $0x43] sm:$0x1] }
  0x49   : > { %v2467_v25 = vsel %vm411_vm4, %v2466_v1, %v2465_v20  ;;  %v1775_v26 = vsel %vm399_vm0, %v1774_v18, %v1742_v2  ;;  %v1784_v27 = vrot.slane %v1748_v16, 2  ;;  %v1786_v28 = vrot.slane %v1749_v17, 1  ;;  %v2435_v29 = vld [vmem:[%s6924_s16 + $0x4b] sm:$0x1]  ;;  %v2436_v30 = vld [vmem:[%s6924_s16 + $0x53] sm:$0x1] }
  0x4a   : > { %v2469_v31 = vsel %vm414_vm5, %v2468_v5, %v2467_v25  ;;  %v1777_v32 = vsel %vm402_vm1, %v1776_v19, %v1775_v26  ;;  %v2437_v33 = vld [vmem:[%s6924_s16 + $0x5b] sm:$0x1]  ;;  %v2438_v34 = vld [vmem:[%s6924_s16 + $0x63] sm:$0x1]  ;;  %v2439_v35 = vld [vmem:[%s6924_s16 + $0x6b] sm:$0x1] }
  0x4b   : > { %v2471_v36 = vsel %vm417_vm6, %v2470_v6, %v2469_v31  ;;  %v1779_v37 = vsel %vm405_vm2, %v1778_v21, %v1777_v32  ;;  %v2440_v38 = vld [vmem:[%s6924_s16 + $0x73] sm:$0x1]  ;;  %v2441_v39 = vld [vmem:[%s6924_s16 + $0x7b] sm:$0x1]  ;;  %v2472_v40 = vrot.slane %v2435_v29, 7  ;;  %v2474_v41 = vrot.slane %v2436_v30, 6 }
  0x4c   : > { %2488 = vxpose.xlu1.b32.start [1/2] (short) (narrow) %v2471_v36, 8  ;;  %v1781_v42 = vsel %vm408_vm3, %v1780_v22, %v1779_v37  ;;  %v2476_v43 = vrot.slane %v2437_v33, 5  ;;  %v2478_v44 = vrot.slane %v2438_v34, 4  ;;  %v2480_v45 = vrot.slane %v2439_v35, 3  ;;  %v1750_v46 = vld [vmem:[%s6924_s16 + $0x42] sm:$0x1] }
  0x4d   : > { %v1783_v47 = vsel %vm411_vm4, %v1782_v23, %v1781_v42  ;;  %v2473_v48 = vsel %vm399_vm0, %v2472_v40, %v2434_v24  ;;  %v2482_v49 = vrot.slane %v2440_v38, 2  ;;  %v2484_v50 = vrot.slane %v2441_v39, 1  ;;  %v1751_v51 = vld [vmem:[%s6924_s16 + $0x4a] sm:$0x1]  ;;  %v1752_v52 = vld [vmem:[%s6924_s16 + $0x52] sm:$0x1] }
  0x4e   : > { %v1785_v53 = vsel %vm414_vm5, %v1784_v27, %v1783_v47  ;;  %v2475_v54 = vsel %vm402_vm1, %v2474_v41, %v2473_v48  ;;  %v1753_v55 = vld [vmem:[%s6924_s16 + $0x5a] sm:$0x1]  ;;  %v1754_v56 = vld [vmem:[%s6924_s16 + $0x62] sm:$0x1]  ;;  %v1755_v57 = vld [vmem:[%s6924_s16 + $0x6a] sm:$0x1] }
  0x4f   : > { %v1787_v58 = vsel %vm417_vm6, %v1786_v28, %v1785_v53  ;;  %v2477_v59 = vsel %vm405_vm2, %v2476_v43, %v2475_v54  ;;  %v1756_v60 = vld [vmem:[%s6924_s16 + $0x72] sm:$0x1]  ;;  %v1757_v61 = vld [vmem:[%s6924_s16 + $0x7a] sm:$0x1]  ;;  %v1788_v62 = vrot.slane %v1751_v51, 7  ;;  %v1790_v63 = vrot.slane %v1752_v52, 6 }
  0x50   : > { %1804 = vxpose.xlu0.b32.start [1/2] (short) (narrow) %v1787_v58, 8  ;;  %v2479_v0 = vsel %vm408_vm3, %v2478_v44, %v2477_v59  ;;  %v1792_v1 = vrot.slane %v1753_v55, 5  ;;  %v1794_v2 = vrot.slane %v1754_v56, 4  ;;  %v1796_v3 = vrot.slane %v1755_v57, 3  ;;  %v3794_v4 = vld [vmem:[%s6924_s16 + $0x5] sm:$0x1] }
  0x51   : > { %v2481_v5 = vsel %vm411_vm4, %v2480_v45, %v2479_v0  ;;  %v1789_v6 = vsel %vm399_vm0, %v1788_v62, %v1750_v46  ;;  %v1798_v7 = vrot.slane %v1756_v60, 2  ;;  %v1800_v8 = vrot.slane %v1757_v61, 1  ;;  %v3795_v9 = vld [vmem:[%s6924_s16 + $0xd] sm:$0x1]  ;;  %v3796_v10 = vld [vmem:[%s6924_s16 + $0x15] sm:$0x1] }
  0x52   : > { %v2483_v11 = vsel %vm414_vm5, %v2482_v49, %v2481_v5  ;;  %v1791_v12 = vsel %vm402_vm1, %v1790_v63, %v1789_v6  ;;  %v3797_v13 = vld [vmem:[%s6924_s16 + $0x1d] sm:$0x1]  ;;  %v3798_v14 = vld [vmem:[%s6924_s16 + $0x25] sm:$0x1]  ;;  %v3799_v15 = vld [vmem:[%s6924_s16 + $0x2d] sm:$0x1] }
  0x53   : > { %v2485_v16 = vsel %vm417_vm6, %v2484_v50, %v2483_v11  ;;  %v1793_v17 = vsel %vm405_vm2, %v1792_v1, %v1791_v12  ;;  %v3800_v18 = vld [vmem:[%s6924_s16 + $0x35] sm:$0x1]  ;;  %v3801_v19 = vld [vmem:[%s6924_s16 + $0x3d] sm:$0x1]  ;;  %v3826_v20 = vrot.slane %v3795_v9, 7  ;;  %v3828_v21 = vrot.slane %v3796_v10, 6 }
  0x54   : > { %2489 = vxpose.xlu1.b32.end [2/2] (short) (narrow) %v2485_v16, 8  ;;  %v1795_v22 = vsel %vm408_vm3, %v1794_v2, %v1793_v17  ;;  %v3830_v23 = vrot.slane %v3797_v13, 5  ;;  %v3832_v24 = vrot.slane %v3798_v14, 4  ;;  %v3834_v25 = vrot.slane %v3799_v15, 3  ;;  %v3110_v26 = vld [vmem:[%s6924_s16 + $0x4] sm:$0x1] }
  0x55   : > { %v1797_v27 = vsel %vm411_vm4, %v1796_v3, %v1795_v22  ;;  %v3827_v28 = vsel %vm399_vm0, %v3826_v20, %v3794_v4  ;;  %v3836_v29 = vrot.slane %v3800_v18, 2  ;;  %v3838_v30 = vrot.slane %v3801_v19, 1  ;;  %v3111_v31 = vld [vmem:[%s6924_s16 + $0xc] sm:$0x1]  ;;  %v3112_v32 = vld [vmem:[%s6924_s16 + $0x14] sm:$0x1] }
  0x56   : > { %v1799_v33 = vsel %vm414_vm5, %v1798_v7, %v1797_v27  ;;  %v3829_v34 = vsel %vm402_vm1, %v3828_v21, %v3827_v28  ;;  %v3113_v35 = vld [vmem:[%s6924_s16 + $0x1c] sm:$0x1]  ;;  %v3114_v36 = vld [vmem:[%s6924_s16 + $0x24] sm:$0x1]  ;;  %v3115_v37 = vld [vmem:[%s6924_s16 + $0x2c] sm:$0x1] }
  0x57   : > { %v1801_v38 = vsel %vm417_vm6, %v1800_v8, %v1799_v33  ;;  %v3831_v39 = vsel %vm405_vm2, %v3830_v23, %v3829_v34  ;;  %v3116_v40 = vld [vmem:[%s6924_s16 + $0x34] sm:$0x1]  ;;  %v3117_v41 = vld [vmem:[%s6924_s16 + $0x3c] sm:$0x1]  ;;  %v3142_v42 = vrot.slane %v3111_v31, 7  ;;  %v3144_v43 = vrot.slane %v3112_v32, 6 }
  0x58   : > { %1805 = vxpose.xlu0.b32.end [2/2] (short) (narrow) %v1801_v38, 8  ;;  %v3833_v44 = vsel %vm408_vm3, %v3832_v24, %v3831_v39  ;;  %v3146_v45 = vrot.slane %v3113_v35, 5  ;;  %v3148_v46 = vrot.slane %v3114_v36, 4  ;;  %v3150_v47 = vrot.slane %v3115_v37, 3  ;;  %v3802_v48 = vld [vmem:[%s6924_s16 + $0x45] sm:$0x1] }
  0x59   : > { %v3835_v49 = vsel %vm411_vm4, %v3834_v25, %v3833_v44  ;;  %v3143_v50 = vsel %vm399_vm0, %v3142_v42, %v3110_v26  ;;  %v3152_v51 = vrot.slane %v3116_v40, 2  ;;  %v3154_v52 = vrot.slane %v3117_v41, 1  ;;  %v3803_v53 = vld [vmem:[%s6924_s16 + $0x4d] sm:$0x1]  ;;  %v3804_v54 = vld [vmem:[%s6924_s16 + $0x55] sm:$0x1] }
  0x5a   : > { %v3837_v55 = vsel %vm414_vm5, %v3836_v29, %v3835_v49  ;;  %v3145_v56 = vsel %vm402_vm1, %v3144_v43, %v3143_v50  ;;  %v3805_v57 = vld [vmem:[%s6924_s16 + $0x5d] sm:$0x1]  ;;  %v3806_v58 = vld [vmem:[%s6924_s16 + $0x65] sm:$0x1]  ;;  %v3807_v59 = vld [vmem:[%s6924_s16 + $0x6d] sm:$0x1] }
  0x5b   : > { %v3839_v60 = vsel %vm417_vm6, %v3838_v30, %v3837_v55  ;;  %v3147_v61 = vsel %vm405_vm2, %v3146_v45, %v3145_v56  ;;  %v3808_v62 = vld [vmem:[%s6924_s16 + $0x75] sm:$0x1]  ;;  %v3809_v63 = vld [vmem:[%s6924_s16 + $0x7d] sm:$0x1]  ;;  %v3840_v0 = vrot.slane %v3803_v53, 7  ;;  %v3842_v1 = vrot.slane %v3804_v54, 6 }
  0x5c   : > { %3856 = vxpose.xlu1.b32.start [1/2] (short) (narrow) %v3839_v60, 8  ;;  %v3149_v2 = vsel %vm408_vm3, %v3148_v46, %v3147_v61  ;;  %v3844_v3 = vrot.slane %v3805_v57, 5  ;;  %v3846_v4 = vrot.slane %v3806_v58, 4  ;;  %v3848_v5 = vrot.slane %v3807_v59, 3  ;;  %v3118_v6 = vld [vmem:[%s6924_s16 + $0x44] sm:$0x1] }
  0x5d   : > { %v3151_v7 = vsel %vm411_vm4, %v3150_v47, %v3149_v2  ;;  %v3841_v8 = vsel %vm399_vm0, %v3840_v0, %v3802_v48  ;;  %v3850_v9 = vrot.slane %v3808_v62, 2  ;;  %v3852_v10 = vrot.slane %v3809_v63, 1  ;;  %v3119_v11 = vld [vmem:[%s6924_s16 + $0x4c] sm:$0x1]  ;;  %v3120_v12 = vld [vmem:[%s6924_s16 + $0x54] sm:$0x1] }
  0x5e   : > { %v3153_v13 = vsel %vm414_vm5, %v3152_v51, %v3151_v7  ;;  %v3843_v14 = vsel %vm402_vm1, %v3842_v1, %v3841_v8  ;;  %v3121_v15 = vld [vmem:[%s6924_s16 + $0x5c] sm:$0x1]  ;;  %v3122_v16 = vld [vmem:[%s6924_s16 + $0x64] sm:$0x1]  ;;  %v3123_v17 = vld [vmem:[%s6924_s16 + $0x6c] sm:$0x1] }
  0x5f   : > { %v3155_v18 = vsel %vm417_vm6, %v3154_v52, %v3153_v13  ;;  %v3845_v19 = vsel %vm405_vm2, %v3844_v3, %v3843_v14  ;;  %v3124_v20 = vld [vmem:[%s6924_s16 + $0x74] sm:$0x1]  ;;  %v3125_v21 = vld [vmem:[%s6924_s16 + $0x7c] sm:$0x1]  ;;  %v3156_v22 = vrot.slane %v3119_v11, 7  ;;  %v3158_v23 = vrot.slane %v3120_v12, 6 }
  0x60   : > { %3172 = vxpose.xlu0.b32.start [1/2] (short) (narrow) %v3155_v18, 8  ;;  %v3847_v24 = vsel %vm408_vm3, %v3846_v4, %v3845_v19  ;;  %v3160_v25 = vrot.slane %v3121_v15, 5  ;;  %v3162_v26 = vrot.slane %v3122_v16, 4  ;;  %v3164_v27 = vrot.slane %v3123_v17, 3  ;;  %v5162_v28 = vld [vmem:[%s6924_s16 + $0x7] sm:$0x1] }
  0x61   : > { %v3849_v29 = vsel %vm411_vm4, %v3848_v5, %v3847_v24  ;;  %v3157_v30 = vsel %vm399_vm0, %v3156_v22, %v3118_v6  ;;  %v3166_v31 = vrot.slane %v3124_v20, 2  ;;  %v3168_v32 = vrot.slane %v3125_v21, 1  ;;  %v5163_v33 = vld [vmem:[%s6924_s16 + $0xf] sm:$0x1]  ;;  %v5164_v34 = vld [vmem:[%s6924_s16 + $0x17] sm:$0x1] }
  0x62   : > { %v3851_v35 = vsel %vm414_vm5, %v3850_v9, %v3849_v29  ;;  %v3159_v36 = vsel %vm402_vm1, %v3158_v23, %v3157_v30  ;;  %v5165_v37 = vld [vmem:[%s6924_s16 + $0x1f] sm:$0x1]  ;;  %v5166_v38 = vld [vmem:[%s6924_s16 + $0x27] sm:$0x1]  ;;  %v5167_v39 = vld [vmem:[%s6924_s16 + $0x2f] sm:$0x1] }
  0x63   : > { %v3853_v40 = vsel %vm417_vm6, %v3852_v10, %v3851_v35  ;;  %v3161_v41 = vsel %vm405_vm2, %v3160_v25, %v3159_v36  ;;  %v5168_v42 = vld [vmem:[%s6924_s16 + $0x37] sm:$0x1]  ;;  %v5169_v43 = vld [vmem:[%s6924_s16 + $0x3f] sm:$0x1]  ;;  %v5194_v44 = vrot.slane %v5163_v33, 7  ;;  %v5196_v45 = vrot.slane %v5164_v34, 6 }
  0x64   : > { %3857 = vxpose.xlu1.b32.end [2/2] (short) (narrow) %v3853_v40, 8  ;;  %v3163_v46 = vsel %vm408_vm3, %v3162_v26, %v3161_v41  ;;  %v5198_v47 = vrot.slane %v5165_v37, 5  ;;  %v5200_v48 = vrot.slane %v5166_v38, 4  ;;  %v5202_v49 = vrot.slane %v5167_v39, 3  ;;  %v4478_v50 = vld [vmem:[%s6924_s16 + $0x6] sm:$0x1] }
  0x65   : > { %v3165_v51 = vsel %vm411_vm4, %v3164_v27, %v3163_v46  ;;  %v5195_v52 = vsel %vm399_vm0, %v5194_v44, %v5162_v28  ;;  %v5204_v53 = vrot.slane %v5168_v42, 2  ;;  %v5206_v54 = vrot.slane %v5169_v43, 1  ;;  %v4479_v55 = vld [vmem:[%s6924_s16 + $0xe] sm:$0x1]  ;;  %v4480_v56 = vld [vmem:[%s6924_s16 + $0x16] sm:$0x1] }
  0x66   : > { %v3167_v57 = vsel %vm414_vm5, %v3166_v31, %v3165_v51  ;;  %v5197_v58 = vsel %vm402_vm1, %v5196_v45, %v5195_v52  ;;  %v4481_v59 = vld [vmem:[%s6924_s16 + $0x1e] sm:$0x1]  ;;  %v4482_v60 = vld [vmem:[%s6924_s16 + $0x26] sm:$0x1]  ;;  %v4483_v61 = vld [vmem:[%s6924_s16 + $0x2e] sm:$0x1] }
  0x67   : > { %v3169_v62 = vsel %vm417_vm6, %v3168_v32, %v3167_v57  ;;  %v5199_v63 = vsel %vm405_vm2, %v5198_v47, %v5197_v58  ;;  %v4484_v0 = vld [vmem:[%s6924_s16 + $0x36] sm:$0x1]  ;;  %v4485_v1 = vld [vmem:[%s6924_s16 + $0x3e] sm:$0x1]  ;;  %v4510_v2 = vrot.slane %v4479_v55, 7  ;;  %v4512_v3 = vrot.slane %v4480_v56, 6 }
  0x68   : > { %3173 = vxpose.xlu0.b32.end [2/2] (short) (narrow) %v3169_v62, 8  ;;  %v5201_v4 = vsel %vm408_vm3, %v5200_v48, %v5199_v63  ;;  %v4514_v5 = vrot.slane %v4481_v59, 5  ;;  %v4516_v6 = vrot.slane %v4482_v60, 4  ;;  %v4518_v7 = vrot.slane %v4483_v61, 3  ;;  %v5170_v8 = vld [vmem:[%s6924_s16 + $0x47] sm:$0x1] }
  0x69   : > { %v5203_v9 = vsel %vm411_vm4, %v5202_v49, %v5201_v4  ;;  %v4511_v10 = vsel %vm399_vm0, %v4510_v2, %v4478_v50  ;;  %v4520_v11 = vrot.slane %v4484_v0, 2  ;;  %v4522_v12 = vrot.slane %v4485_v1, 1  ;;  %v5171_v13 = vld [vmem:[%s6924_s16 + $0x4f] sm:$0x1]  ;;  %v5172_v14 = vld [vmem:[%s6924_s16 + $0x57] sm:$0x1] }
  0x6a   : > { %v5205_v15 = vsel %vm414_vm5, %v5204_v53, %v5203_v9  ;;  %v4513_v16 = vsel %vm402_vm1, %v4512_v3, %v4511_v10  ;;  %v5173_v17 = vld [vmem:[%s6924_s16 + $0x5f] sm:$0x1]  ;;  %v5174_v18 = vld [vmem:[%s6924_s16 + $0x67] sm:$0x1]  ;;  %v5175_v19 = vld [vmem:[%s6924_s16 + $0x6f] sm:$0x1] }
  0x6b   : > { %v5207_v20 = vsel %vm417_vm6, %v5206_v54, %v5205_v15  ;;  %v4515_v21 = vsel %vm405_vm2, %v4514_v5, %v4513_v16  ;;  %v5176_v22 = vld [vmem:[%s6924_s16 + $0x77] sm:$0x1]  ;;  %v5177_v23 = vld [vmem:[%s6924_s16 + $0x7f] sm:$0x1]  ;;  %v5208_v24 = vrot.slane %v5171_v13, 7  ;;  %v5210_v25 = vrot.slane %v5172_v14, 6 }
  0x6c   : > { %5224 = vxpose.xlu1.b32.start [1/2] (short) (narrow) %v5207_v20, 8  ;;  %v4517_v26 = vsel %vm408_vm3, %v4516_v6, %v4515_v21  ;;  %v5212_v27 = vrot.slane %v5173_v17, 5  ;;  %v5214_v28 = vrot.slane %v5174_v18, 4  ;;  %v5216_v29 = vrot.slane %v5175_v19, 3  ;;  %v4486_v30 = vld [vmem:[%s6924_s16 + $0x46] sm:$0x1] }
  0x6d   : > { %v4519_v31 = vsel %vm411_vm4, %v4518_v7, %v4517_v26  ;;  %v5209_v32 = vsel %vm399_vm0, %v5208_v24, %v5170_v8  ;;  %v5218_v33 = vrot.slane %v5176_v22, 2  ;;  %v5220_v34 = vrot.slane %v5177_v23, 1  ;;  %v4487_v35 = vld [vmem:[%s6924_s16 + $0x4e] sm:$0x1]  ;;  %v4488_v36 = vld [vmem:[%s6924_s16 + $0x56] sm:$0x1] }
  0x6e   : > { %v4521_v37 = vsel %vm414_vm5, %v4520_v11, %v4519_v31  ;;  %v5211_v38 = vsel %vm402_vm1, %v5210_v25, %v5209_v32  ;;  %v4489_v39 = vld [vmem:[%s6924_s16 + $0x5e] sm:$0x1]  ;;  %v4490_v40 = vld [vmem:[%s6924_s16 + $0x66] sm:$0x1]  ;;  %v4491_v41 = vld [vmem:[%s6924_s16 + $0x6e] sm:$0x1] }
  0x6f   : > { %v4523_v42 = vsel %vm417_vm6, %v4522_v12, %v4521_v37  ;;  %v5213_v43 = vsel %vm405_vm2, %v5212_v27, %v5211_v38  ;;  %v4492_v44 = vld [vmem:[%s6924_s16 + $0x76] sm:$0x1]  ;;  %v4493_v45 = vld [vmem:[%s6924_s16 + $0x7e] sm:$0x1]  ;;  %v4524_v46 = vrot.slane %v4487_v35, 7  ;;  %v4526_v47 = vrot.slane %v4488_v36, 6 }
  0x70   : > { %4540 = vxpose.xlu0.b32.start [1/2] (short) (narrow) %v4523_v42, 8  ;;  %v5215_v48 = vsel %vm408_vm3, %v5214_v28, %v5213_v43  ;;  %v4528_v49 = vrot.slane %v4489_v39, 5  ;;  %v4530_v50 = vrot.slane %v4490_v40, 4  ;;  %v4532_v51 = vrot.slane %v4491_v41, 3  ;;  %v350_v52 = vld [vmem:[%s7158_s17] sm:$0x1] }
  0x71   : > { %v5217_v53 = vsel %vm411_vm4, %v5216_v29, %v5215_v48  ;;  %v4525_v54 = vsel %vm399_vm0, %v4524_v46, %v4486_v30  ;;  %v4534_v55 = vrot.slane %v4492_v44, 2  ;;  %v4536_v56 = vrot.slane %v4493_v45, 1  ;;  %v351_v57 = vld [vmem:[%s7158_s17 + $0x8] sm:$0x1]  ;;  %v352_v58 = vld [vmem:[%s7158_s17 + $0x10] sm:$0x1] }
  0x72   : > { %v5219_v59 = vsel %vm414_vm5, %v5218_v33, %v5217_v53  ;;  %v4527_v60 = vsel %vm402_vm1, %v4526_v47, %v4525_v54  ;;  %v483_v61 = vrot.slane %v351_v57, 7  ;;  %v6790_v0 = vmov 0.0|0.0   ;;  %v353_v1 = vld [vmem:[%s7158_s17 + $0x18] sm:$0x1]  ;;  %v354_v2 = vld [vmem:[%s7158_s17 + $0x20] sm:$0x1] }
  0x73   : > { %v5221_v62 = vsel %vm417_vm6, %v5220_v34, %v5219_v59  ;;  %v4529_v63 = vsel %vm405_vm2, %v4528_v49, %v4527_v60  ;;  %6456 = vmatprep.subr.bf16.mxu0 %v6790_v0  ;;  %6474 = vmatprep.subr.bf16.mxu1 %v6790_v0  ;;  %v355_v3 = vld [vmem:[%s7158_s17 + $0x28] sm:$0x1]  ;;  %v356_v5 = vld [vmem:[%s7158_s17 + $0x30] sm:$0x1]  ;;  %v357_v6 = vld [vmem:[%s7158_s17 + $0x38] sm:$0x1] }
  0x74   : > { %5225 = vxpose.xlu1.b32.end [2/2] (short) (narrow) %v5221_v62, 8  ;;  %v4531_v4 = vsel %vm408_vm3, %v4530_v50, %v4529_v63  ;;  %v484_v7 = vsel %vm399_vm0, %v483_v61, %v350_v52  ;;  %v485_v8 = vrot.slane %v352_v58, 6  ;;  %v358_v10 = vld [vmem:[%s7158_s17 + $0x40] sm:$0x1]  ;;  %v359_v11 = vld [vmem:[%s7158_s17 + $0x48] sm:$0x1] }
  0x75   : > { %v4533_v9 = vsel %vm411_vm4, %v4532_v51, %v4531_v4  ;;  %v360_v12 = vld [vmem:[%s7158_s17 + $0x50] sm:$0x1]  ;;  %v361_v14 = vld [vmem:[%s7158_s17 + $0x58] sm:$0x1]  ;;  %v362_v15 = vld [vmem:[%s7158_s17 + $0x60] sm:$0x1] }
  0x76   : > { %v4535_v13 = vsel %vm414_vm5, %v4534_v55, %v4533_v9  ;;  %v363_v16 = vld [vmem:[%s7158_s17 + $0x68] sm:$0x1]  ;;  %v486_v17 = vsel %vm402_vm1, %v485_v8, %v484_v7  ;;  %v364_v19 = vld [vmem:[%s7158_s17 + $0x70] sm:$0x1]  ;;  %v487_v20 = vrot.slane %v353_v1, 5  ;;  %v489_v21 = vrot.slane %v354_v2, 4 }
  0x77   : > { %v4537_v18 = vsel %vm417_vm6, %v4536_v56, %v4535_v13  ;;  %v491_v22 = vrot.slane %v355_v3, 3  ;;  %v365_v23 = vld [vmem:[%s7158_s17 + $0x78] sm:$0x1]  ;;  %v493_v24 = vrot.slane %v356_v5, 2  ;;  %v497_v25 = vrot.slane %v359_v11, 7  ;;  %s5843_s24 = sshll.u32 %s7847_s22, 4  ;;  %s7963_s24 = int_to_ptr.vmem [resolvable:$true] %s5843_s24 }
  0x78   : > { %4541 = vxpose.xlu0.b32.end [2/2] (short) (narrow) %v4537_v18, 8  ;;  %v499_v26 = vrot.slane %v360_v12, 6  ;;  %v488_v27 = vsel %vm405_vm2, %v487_v20, %v486_v17  ;;  %v495_v28 = vrot.slane %v357_v6, 1  ;;  %v501_v29 = vrot.slane %v361_v14, 5  ;;  %v1042_v38 = vld [vmem:[%s7158_s17 + $0x1] sm:$0x1] }
  0x79   : > { %v503_v30 = vrot.slane %v362_v15, 4  ;;  %v490_v31 = vsel %vm408_vm3, %v489_v21, %v488_v27  ;;  %v498_v32 = vsel %vm399_vm0, %v497_v25, %v358_v10  ;;  %v505_v33 = vrot.slane %v363_v16, 3  ;;  %v1043_v39 = vld [vmem:[%s7158_s17 + $0x9] sm:$0x1]  ;;  %v1044_v42 = vld [vmem:[%s7158_s17 + $0x11] sm:$0x1] }
  0x7a   : > { %v492_v34 = vsel %vm411_vm4, %v491_v22, %v490_v31  ;;  %v500_v35 = vsel %vm402_vm1, %v499_v26, %v498_v32  ;;  %v507_v36 = vrot.slane %v364_v19, 2  ;;  %v509_v37 = vrot.slane %v365_v23, 1  ;;  %v1045_v43 = vld [vmem:[%s7158_s17 + $0x19] sm:$0x1]  ;;  %v1046_v44 = vld [vmem:[%s7158_s17 + $0x21] sm:$0x1] }
  0x7b   : > { %v494_v40 = vsel %vm414_vm5, %v493_v24, %v492_v34  ;;  %v502_v41 = vsel %vm405_vm2, %v501_v29, %v500_v35  ;;  %v1047_v47 = vld [vmem:[%s7158_s17 + $0x29] sm:$0x1]  ;;  %v1048_v48 = vld [vmem:[%s7158_s17 + $0x31] sm:$0x1]  ;;  %v1049_v49 = vld [vmem:[%s7158_s17 + $0x39] sm:$0x1] }
  0x7c   : > { %v496_v45 = vsel %vm417_vm6, %v495_v28, %v494_v40  ;;  %v504_v46 = vsel %vm408_vm3, %v503_v30, %v502_v41  ;;  %v1051_v52 = vld [vmem:[%s7158_s17 + $0x49] sm:$0x1]  ;;  %v1052_v53 = vld [vmem:[%s7158_s17 + $0x51] sm:$0x1]  ;;  %v1168_v54 = vrot.slane %v1043_v39, 7  ;;  %v1170_v58 = vrot.slane %v1044_v42, 6 }
  0x7d   : > { %v506_v50 = vsel %vm411_vm4, %v505_v33, %v504_v46  ;;  %v518_v51 = vand.u32 4294901760, %v496_v45  ;;  %v1050_v56 = vld [vmem:[%s7158_s17 + $0x41] sm:$0x1]  ;;  %v1053_v57 = vld [vmem:[%s7158_s17 + $0x59] sm:$0x1]  ;;  %v1172_v59 = vrot.slane %v1045_v43, 5 }
  0x7e   : > { %v508_v55 = vsel %vm414_vm5, %v507_v36, %v506_v50  ;;  %v1174_v60 = vrot.slane %v1046_v44, 4  ;;  %v1054_v63 = vld [vmem:[%s7158_s17 + $0x61] sm:$0x1]  ;;  %v1055_v1 = vld [vmem:[%s7158_s17 + $0x69] sm:$0x1]  ;;  %v1169_v2 = vsel %vm399_vm0, %v1168_v54, %v1042_v38  ;;  %v1176_v3 = vrot.slane %v1047_v47, 3 }
  0x7f   : > { %v510_v61 = vsel %vm417_vm6, %v509_v37, %v508_v55  ;;  %v7214_v62 = vsub.f32 %v496_v45, %v518_v51  ;;  %v1056_v5 = vld [vmem:[%s7158_s17 + $0x71] sm:$0x1]  ;;  %v1171_v6 = vsel %vm402_vm1, %v1170_v58, %v1169_v2  ;;  %v1178_v7 = vrot.slane %v1048_v48, 2  ;;  %v1057_v9 = vld [vmem:[%s7158_s17 + $0x79] sm:$0x1]  ;;  %s5831_s27 = scalar_lea.sflag [#allocation5], %s6919_s8 }
  0x80   : > { %v521_v4 = vand.u32 4294901760, %v510_v61  ;;  %v1180_v8 = vrot.slane %v1049_v49, 1  ;;  %v1173_v10 = vsel %vm405_vm2, %v1172_v59, %v1171_v6  ;;  %v1182_v11 = vrot.slane %v1051_v52, 7  ;;  %v1727_v2 = vld [vmem:[%s7158_s17 + $0xa] sm:$0x1]  ;;  %s6726_s28 = scalar_lea.vmem %s7963_s24, 1024 }
  0x81   : > { %v1184_v12 = vrot.slane %v1052_v53, 6  ;;  %v1186_v13 = vrot.slane %v1053_v57, 5  ;;  %v1175_v16 = vsel %vm408_vm3, %v1174_v60, %v1173_v10  ;;  %v1188_v17 = vrot.slane %v1054_v63, 4  ;;  %v2411_v60 = vld [vmem:[%s7158_s17 + $0xb] sm:$0x1]  ;;  %p6727_p13 = scmp.ne.s32.totalorder %s7963_s24, %s6726_s28  ;;  %s6794_s29 = smov [#allocation4]  }
  0x82   : > { %v7223_v14 = vpack.c.bf16 %v521_v4, %v518_v51  ;;  %v7225_v15 = vsub.f32 %v510_v61, %v521_v4  ;;  %v1177_v18 = vsel %vm411_vm4, %v1176_v3, %v1175_v16  ;;  %v1183_v19 = vsel %vm399_vm0, %v1182_v11, %v1050_v56  ;;  %v2419_v61 = vld [vmem:[%s7158_s17 + $0x4b] sm:$0x1]  ;;  %v1735_v3 = vld [vmem:[%s7158_s17 + $0x4a] sm:$0x1]  ;;  %v2412_v6 = vld [vmem:[%s7158_s17 + $0x13] sm:$0x1] }
  0x83   : > { %v1190_v20 = vrot.slane %v1055_v1, 3  ;;  %v1192_v21 = vrot.slane %v1056_v5, 2  ;;  %v1179_v22 = vsel %vm414_vm5, %v1178_v7, %v1177_v18  ;;  %v1185_v23 = vsel %vm402_vm1, %v1184_v12, %v1183_v19  ;;  %v1728_v5 = vld [vmem:[%s7158_s17 + $0x12] sm:$0x1]  ;;  %v2420_v7 = vld [vmem:[%s7158_s17 + $0x53] sm:$0x1]  ;;  %p6728_p0 = pnand %p6727_p13, %p6855_p6 }
  0x84   : > { %6458 = vmatpush3.bf16.msra.mxu0 %v7223_v14  ;;  %v1194_v24 = vrot.slane %v1057_v9, 1  ;;  %v1181_v25 = vsel %vm417_vm6, %v1180_v8, %v1179_v22  ;;  %v1187_v26 = vsel %vm405_vm2, %v1186_v13, %v1185_v23  ;;  %v597_v27 = vand.u32 4294901760, %v7214_v62  ;;  %v1726_v12 = vld [vmem:[%s7158_s17 + $0x2] sm:$0x1]  ;;  %v2410_v13 = vld [vmem:[%s7158_s17 + $0x3] sm:$0x1] }
  0x85   : > { %6459 = vmatprep.subr.bf16.mxu0 %v6790_v0  ;;  %v1189_v28 = vsel %vm408_vm3, %v1188_v17, %v1187_v26  ;;  %v6792_v29 = vmov 0.0   ;;  %v604_v30 = vand.u32 4294901760, %v7225_v15  ;;  %v6463_v31 = vpack.c.bf16 %v7225_v15, %v7214_v62  ;;  %v2418_v16 = vld [vmem:[%s7158_s17 + $0x43] sm:$0x1]  ;;  %v1736_v17 = vld [vmem:[%s7158_s17 + $0x52] sm:$0x1]  ;;  %p6729_p1 = pneg %p6728_p0 }
  0x86   : > { %6124 = vmatprep.mubr.msk.f32.mxu0 %vm6791_vm7, %v6792_v29  ;;  %6166 = vmatprep.mubr.msk.f32.mxu1 %vm6791_vm7, %v6792_v29  ;;  %v1191_v32 = vsel %vm411_vm4, %v1190_v20, %v1189_v28  ;;  %v598_v33 = vsub.f32 %v7214_v62, %v597_v27  ;;  %v1202_v35 = vand.u32 4294901760, %v1181_v25  ;;  %v2536_v8 = vrot.slane %v2411_v60, 7  ;;  %v2413_v19 = vld [vmem:[%s7158_s17 + $0x1b] sm:$0x1]  ;;  %v1734_v26 = vld [vmem:[%s7158_s17 + $0x42] sm:$0x1] }
  0x87   : > { %v1193_v34 = vsel %vm414_vm5, %v1192_v21, %v1191_v32  ;;  %v605_v36 = vsub.f32 %v7225_v15, %v604_v30  ;;  %v7249_v37 = vpack.c.bf16 %v604_v30, %v597_v27  ;;  %v2550_v9 = vrot.slane %v2419_v61, 7  ;;  %v2421_v22 = vld [vmem:[%s7158_s17 + $0x5b] sm:$0x1]  ;;  %v1737_v32 = vld [vmem:[%s7158_s17 + $0x5a] sm:$0x1]  ;;  %s6730_s30 = sshll.u32 %s6794_s29, 4  ;;  %s6731_s30 = int_to_ptr.vmem [resolvable:$false] %s6730_s30 }
  0x88   : > { %v1195_v38 = vsel %vm417_vm6, %v1194_v24, %v1193_v34  ;;  %v599_v39 = vand.u32 4294901760, %v598_v33  ;;  %v7258_v44 = vsub.f32 %v1181_v25, %v1202_v35  ;;  %v1852_v18 = vrot.slane %v1727_v2, 7  ;;  %v1729_v25 = vld [vmem:[%s7158_s17 + $0x1a] sm:$0x1]  ;;  %v2414_v34 = vld [vmem:[%s7158_s17 + $0x23] sm:$0x1]  ;;  %p6733_p2 = scmp.lt.s32.totalorder %s7963_s24, %s6731_s30 }
  0x89   : > { %v1205_v40 = vand.u32 4294901760, %v1195_v38  ;;  %v606_v41 = vand.u32 4294901760, %v605_v36  ;;  %v1866_v21 = vrot.slane %v1735_v3, 7  ;;  %v2538_v23 = vrot.slane %v2412_v6, 6  ;;  %v2423_v61 = vld [vmem:[%s7158_s17 + $0x6b] sm:$0x1] }
  0x8a   : > { %v1281_v46 = vand.u32 4294901760, %v7258_v44  ;;  %v2552_v24 = vrot.slane %v2420_v7, 6  ;;  %v2537_v27 = vsel %vm399_vm0, %v2536_v8, %v2410_v13  ;;  %v2551_v28 = vsel %vm399_vm0, %v2550_v9, %v2418_v16  ;;  %v1731_v2 = vld [vmem:[%s7158_s17 + $0x2a] sm:$0x1]  ;;  %v2416_v8 = vld [vmem:[%s7158_s17 + $0x33] sm:$0x1] }
  0x8b   : > { %v7252_v42 = vpack.c.bf16 %v1205_v40, %v1202_v35  ;;  %v7254_v43 = vpack.c.bf16 %v606_v41, %v599_v39  ;;  %v7260_v45 = vsub.f32 %v1195_v38, %v1205_v40  ;;  %v1854_v33 = vrot.slane %v1728_v5, 6  ;;  %v2422_v38 = vld [vmem:[%s7158_s17 + $0x63] sm:$0x1]  ;;  %v1730_v41 = vld [vmem:[%s7158_s17 + $0x22] sm:$0x1]  ;;  %s6732_s3 = scalar_lea.vmem %s6731_s30, 2048 }
  0x8c   : > { %v1282_v50 = vsub.f32 %v7258_v44, %v1281_v46  ;;  %v1853_v35 = vsel %vm399_vm0, %v1852_v18, %v1726_v12  ;;  %v1868_v36 = vrot.slane %v1736_v17, 6  ;;  %v2540_v39 = vrot.slane %v2413_v19, 5  ;;  %v1739_v6 = vld [vmem:[%s7158_s17 + $0x6a] sm:$0x1]  ;;  %v2424_v12 = vld [vmem:[%s7158_s17 + $0x73] sm:$0x1]  ;;  %p6734_p3 = scmp.lt.s32.totalorder %s6732_s3, %s6726_s28 }
  0x8d   : > { %6476 = vmatpush3.bf16.msra.mxu1 %v7252_v42  ;;  %v1288_v47 = vand.u32 4294901760, %v7260_v45  ;;  %v2554_v40 = vrot.slane %v2421_v22, 5  ;;  %v1870_v60 = vrot.slane %v1737_v32, 5  ;;  %v1858_v7 = vrot.slane %v1730_v41, 4  ;;  %v1732_v17 = vld [vmem:[%s7158_s17 + $0x32] sm:$0x1] }
  0x8e   : > { %6477 = vmatprep.subr.bf16.mxu1 %v6790_v0  ;;  %v1283_v56 = vand.u32 4294901760, %v1282_v50  ;;  %v2553_v50 = vsel %vm402_vm1, %v2552_v24, %v2551_v28  ;;  %v2558_v16 = vrot.slane %v2423_v61, 3  ;;  %v1860_v22 = vrot.slane %v1731_v2, 3  ;;  %p6735_p4 = por %p6734_p3, %p6733_p2 }
  0x8f   : > { %v1289_v51 = vsub.f32 %v7260_v45, %v1288_v47  ;;  %v2555_v5 = vsel %vm405_vm2, %v2554_v40, %v2553_v50  ;;  %v2560_v28 = vrot.slane %v2424_v12, 2 }
  0x90   : > { %p6736_p5 = pnand %p6735_p4, %p6729_p1 }
  0x91   : > { %v1290_v57 = vand.u32 4294901760, %v1289_v51  ;;  %v6481_v51 = vpack.c.bf16 %v7260_v45, %v7258_v44 }
  0x93   : > { %v6478_v4 = vpack.c.bf16 %v1290_v57, %v1283_v56  ;;  %v2415_v56 = vld [vmem:[%s7158_s17 + $0x2b] sm:$0x1]  ;;  %v1855_v57 = vsel %vm402_vm1, %v1854_v33, %v1853_v35  ;;  %v1741_v35 = vld [vmem:[%s7158_s17 + $0x7a] sm:$0x1] }
  0x94   : > { %v2544_v13 = vrot.slane %v2415_v56, 3 }
  0xc0   : > { %v1136_v48 = vpop.trf.xlu1 }
  0xc1   : > { %v1199_v49 = vsel %vm513_vm8, %v1136_v48, 0  ;;  %v1867_v48 = vsel %vm399_vm0, %v1866_v21, %v1734_v26  ;;  %v1740_v21 = vld [vmem:[%s7158_s17 + $0x72] sm:$0x1]  ;;  %v2425_v26 = vld [vmem:[%s7158_s17 + $0x7b] sm:$0x1] }
  0xc2   : > { %v7271_v52 = vand.u32 4294901760, %v1199_v49  ;;  %v1869_v3 = vsel %vm402_vm1, %v1868_v36, %v1867_v48  ;;  %v1862_v36 = vrot.slane %v1732_v17, 2  ;;  %v2562_v40 = vrot.slane %v2425_v26, 1  ;;  %v3780_v26 = vld [vmem:[%s7158_s17 + $0x15] sm:$0x1] }
  0xc3   : > { %v1871_v18 = vsel %vm405_vm2, %v1870_v60, %v1869_v3 }
  0xc4   : > { %v7274_v53 = vsub.f32 %v1199_v49, %v7271_v52  ;;  %v451_v54 = vpop.trf.xlu0  ;;  %v2539_v49 = vsel %vm402_vm1, %v2538_v23, %v2537_v27  ;;  %v2417_v23 = vld [vmem:[%s7158_s17 + $0x3b] sm:$0x1]  ;;  %v2546_v27 = vrot.slane %v2416_v8, 2 }
  0xc5   : > { %v515_v55 = vsel %vm513_vm8, %v451_v54, 0  ;;  %v1738_v54 = vld [vmem:[%s7158_s17 + $0x62] sm:$0x1] }
  0xc6   : > { %v1270_v58 = vand.u32 4294901760, %v7274_v53  ;;  %v7278_v59 = vand.u32 4294901760, %v515_v55 }
  0xc8   : > { %v7283_v63 = vsub.f32 %v515_v55, %v7278_v59  ;;  %v1271_v1 = vsub.f32 %v7274_v53, %v1270_v58  ;;  %v1856_v55 = vrot.slane %v1729_v25, 5  ;;  %v1874_v25 = vrot.slane %v1739_v6, 3 }
  0xca   : > { %v586_v10 = vand.u32 4294901760, %v7283_v63  ;;  %v1272_v11 = vand.u32 4294901760, %v1271_v1  ;;  %v2542_v1 = vrot.slane %v2414_v34, 4  ;;  %v1857_v9 = vsel %vm405_vm2, %v1856_v55, %v1855_v57  ;;  %v1733_v34 = vld [vmem:[%s7158_s17 + $0x3a] sm:$0x1] }
  0xcb   : > { %v1859_v24 = vsel %vm408_vm3, %v1858_v7, %v1857_v9  ;;  %v1864_v48 = vrot.slane %v1733_v34, 1  ;;  %v6487_v57 = vpack.c.bf16 %v1288_v47, %v1281_v46  ;;  %v3788_v34 = vld [vmem:[%s7158_s17 + $0x55] sm:$0x1] }
  0xcc   : > { %v587_v20 = vsub.f32 %v7283_v63, %v586_v10  ;;  %6167 = vmatmul.mubr.f32.vlgmr.msra.gmra.mrb[0].mxu1 %v1272_v11  ;;  %v1872_v11 = vrot.slane %v1738_v54, 4  ;;  %v1861_v62 = vsel %vm411_vm4, %v1860_v22, %v1859_v24  ;;  %v3787_v22 = vld [vmem:[%s7158_s17 + $0x4d] sm:$0x1]  ;;  %v3103_v24 = vld [vmem:[%s7158_s17 + $0x4c] sm:$0x1] }
  0xcd   : > { %6479 = vmatpush3.bf16.msra.mxu1 %v6478_v4  ;;  %6173 = vmatprep.mubr.msk.f32.mxu1 %vm6791_vm7, %v6792_v29  ;;  %v2541_v4 = vsel %vm405_vm2, %v2540_v39, %v2539_v49  ;;  %v2548_v39 = vrot.slane %v2417_v23, 1  ;;  %v1878_v49 = vrot.slane %v1741_v35, 1  ;;  %v1863_v50 = vsel %vm414_vm5, %v1862_v36, %v1861_v62  ;;  %v3095_v23 = vld [vmem:[%s7158_s17 + $0xc] sm:$0x1]  ;;  %v3786_v62 = vld [vmem:[%s7158_s17 + $0x45] sm:$0x1] }
  0xce   : > { %v588_v30 = vand.u32 4294901760, %v587_v20  ;;  %6480 = vmatprep.subr.bf16.mxu1 %v6790_v0  ;;  %v2543_v19 = vsel %vm408_vm3, %v2542_v1, %v2541_v4  ;;  %v1865_v60 = vsel %vm417_vm6, %v1864_v48, %v1863_v50  ;;  %v3906_v48 = vrot.slane %v3780_v26, 6  ;;  %v3789_v50 = vld [vmem:[%s7158_s17 + $0x5d] sm:$0x1] }
  0xcf   : > { %v2545_v32 = vsel %vm411_vm4, %v2544_v13, %v2543_v19  ;;  %v1886_v44 = vand.u32 4294901760, %v1865_v60 }
  0xd0   : > { %6125 = vmatmul.mubr.f32.vlgmr.msra.gmra.mrb[0].mxu0 %v588_v30  ;;  %v1873_v30 = vsel %vm408_vm3, %v1872_v11, %v1871_v18  ;;  %v2504_v56 = vpop.trf.xlu1  ;;  %v3779_v18 = vld [vmem:[%s7158_s17 + $0xd] sm:$0x1] }
  0xd1   : > { %6461 = vmatpush3.bf16.msra.mxu0 %v7254_v43  ;;  %6131 = vmatprep.mubr.msk.f32.mxu0 %vm6791_vm7, %v6792_v29  ;;  %v2556_v43 = vrot.slane %v2422_v38, 4  ;;  %v1876_v38 = vrot.slane %v1740_v21, 2  ;;  %v1875_v15 = vsel %vm411_vm4, %v1874_v25, %v1873_v30  ;;  %v2567_v2 = vsel %vm513_vm8, %v2504_v56, 0  ;;  %v3778_v25 = vld [vmem:[%s7158_s17 + $0x5] sm:$0x1] }
  0xd2   : > { %6462 = vmatprep.subr.bf16.mxu0 %v6790_v0  ;;  %v7389_v46 = vand.u32 4294901760, %v2567_v2  ;;  %v3097_v56 = vld [vmem:[%s7158_s17 + $0x1c] sm:$0x1] }
  0xd3   : > { %v2557_v20 = vsel %vm408_vm3, %v2556_v43, %v2555_v5 }
  0xd4   : > { %6174 = vmatmul.mubr.f32.vlgmr.msra.gmra.mrb[0].mxu1 %v7271_v52  ;;  %v2559_v33 = vsel %vm411_vm4, %v2558_v16, %v2557_v20  ;;  %v1820_v3 = vpop.trf.xlu0  ;;  %v7407_v6 = vsub.f32 %v2567_v2, %v7389_v46 }
  0xd5   : > { %6482 = vmatpush3.bf16.msra.mxu1 %v6481_v51  ;;  %6180 = vmatprep.mubr.msk.f32.mxu1 %vm6791_vm7, %v6792_v29  ;;  %v2561_v41 = vsel %vm414_vm5, %v2560_v28, %v2559_v33  ;;  %v1877_v51 = vsel %vm414_vm5, %v1876_v38, %v1875_v15  ;;  %v1883_v5 = vsel %vm513_vm8, %v1820_v3, 0  ;;  %v3096_v33 = vld [vmem:[%s7158_s17 + $0x14] sm:$0x1]  ;;  %v3220_v15 = vrot.slane %v3095_v23, 7 }
  0xd6   : > { %6483 = vmatprep.subr.bf16.mxu1 %v6790_v0  ;;  %v2563_v55 = vsel %vm417_vm6, %v2562_v40, %v2561_v41  ;;  %v1879_v61 = vsel %vm417_vm6, %v1878_v49, %v1877_v51  ;;  %v7409_v7 = vand.u32 4294901760, %v1883_v5  ;;  %v2638_v9 = vand.u32 4294901760, %v7407_v6  ;;  %v3104_v40 = vld [vmem:[%s7158_s17 + $0x54] sm:$0x1]  ;;  %v3781_v41 = vld [vmem:[%s7158_s17 + $0x1d] sm:$0x1] }
  0xd7   : > { %v2573_v43 = vand.u32 4294901760, %v2563_v55  ;;  %v1889_v45 = vand.u32 4294901760, %v1879_v61  ;;  %v3102_v49 = vld [vmem:[%s7158_s17 + $0x44] sm:$0x1]  ;;  %v3908_v2 = vrot.slane %v3781_v41, 5 }
  0xd8   : > { %6132 = vmatmul.mubr.f32.vlgmr.msra.gmra.mrb[0].mxu0 %v7278_v59  ;;  %v7422_v11 = vsub.f32 %v1883_v5, %v7409_v7  ;;  %v2639_v19 = vsub.f32 %v7407_v6, %v2638_v9  ;;  %v3100_v41 = vld [vmem:[%s7158_s17 + $0x34] sm:$0x1] }
  0xd9   : > { %6464 = vmatpush3.bf16.msra.mxu0 %v6463_v31  ;;  %6138 = vmatprep.mubr.msk.f32.mxu0 %vm6791_vm7, %v6792_v29  ;;  %v2547_v31 = vsel %vm414_vm5, %v2546_v27, %v2545_v32  ;;  %v7394_v4 = vsub.f32 %v2563_v55, %v2573_v43  ;;  %v3904_v27 = vrot.slane %v3779_v18, 7  ;;  %v7455_v28 = vpack.c.bf16 %v1889_v45, %v1886_v44 }
  0xda   : > { %6465 = vmatprep.subr.bf16.mxu0 %v6790_v0  ;;  %v2549_v54 = vsel %vm417_vm6, %v2548_v39, %v2547_v31  ;;  %v2640_v35 = vand.u32 4294901760, %v2639_v19  ;;  %v3094_v39 = vld [vmem:[%s7158_s17 + $0x4] sm:$0x1]  ;;  %v3234_v31 = vrot.slane %v3103_v24, 7  ;;  %v3224_v19 = vrot.slane %v3097_v56, 5 }
  0xdb   : > { %v2570_v1 = vand.u32 4294901760, %v2549_v54  ;;  %v3905_v51 = vsel %vm399_vm0, %v3904_v27, %v3778_v25  ;;  %v3221_v3 = vsel %vm399_vm0, %v3220_v15, %v3094_v39  ;;  %v3791_v25 = vld [vmem:[%s7158_s17 + $0x6d] sm:$0x1] }
  0xdc   : > { %6181 = vmatmul.mubr.f32.vlgmr.msra.gmra.mrb[0].mxu1 %v7274_v53  ;;  %v7402_v53 = vsub.f32 %v1865_v60, %v1886_v44  ;;  %v3235_v44 = vsel %vm399_vm0, %v3234_v31, %v3102_v49  ;;  %v3907_v5 = vsel %vm402_vm1, %v3906_v48, %v3905_v51  ;;  %v3926_v31 = vrot.slane %v3791_v25, 3  ;;  %v3108_v48 = vld [vmem:[%s7158_s17 + $0x74] sm:$0x1] }
  0xdd   : > { %6485 = vmatpush3.bf16.msra.mxu1 %v7252_v42  ;;  %6187 = vmatprep.mubr.msk.f32.mxu1 %vm6791_vm7, %v6792_v29  ;;  %v7392_v47 = vsub.f32 %v2549_v54, %v2570_v1  ;;  %v7435_v13 = vpack.c.bf16 %v2573_v43, %v2570_v1  ;;  %v3920_v54 = vrot.slane %v3788_v34, 6  ;;  %v3236_v1 = vrot.slane %v3104_v40, 6  ;;  %v3782_v43 = vld [vmem:[%s7158_s17 + $0x25] sm:$0x1] }
  0xde   : > { %6486 = vmatprep.subr.bf16.mxu1 %v6790_v0  ;;  %v3909_v26 = vsel %vm405_vm2, %v3908_v2, %v3907_v5  ;;  %v3109_v2 = vld [vmem:[%s7158_s17 + $0x7c] sm:$0x1] }
  0xdf   : > { %v2649_v8 = vand.u32 4294901760, %v7392_v47  ;;  %v6517_v18 = vpack.c.bf16 %v7394_v4, %v7392_v47  ;;  %v3237_v24 = vsel %vm402_vm1, %v3236_v1, %v3235_v44  ;;  %v3101_v1 = vld [vmem:[%s7158_s17 + $0x3c] sm:$0x1]  ;;  %v3244_v44 = vrot.slane %v3108_v48, 2 }
  0xe0   : > { %6139 = vmatmul.mubr.f32.vlgmr.msra.gmra.mrb[0].mxu0 %v7283_v63  ;;  %v2656_v63 = vand.u32 4294901760, %v7394_v4 }
  0xe1   : > { %6467 = vmatpush3.bf16.msra.mxu0 %v7223_v14  ;;  %6145 = vmatprep.mubr.msk.f32.mxu0 %vm6791_vm7, %v6792_v29 }
  0xe2   : > { %6468 = vmatprep.subr.bf16.mxu0 %v6790_v0  ;;  %v2657_v12 = vsub.f32 %v7394_v4, %v2656_v63  ;;  %v6523_v25 = vpack.c.bf16 %v2656_v63, %v2649_v8 }
  0xe4   : > { %6188 = vmatmul.mubr.f32.vlgmr.msra.gmra.mrb[0].mxu1 %v1270_v58  ;;  %v7404_v58 = vsub.f32 %v1879_v61, %v1889_v45  ;;  %v2658_v21 = vand.u32 4294901760, %v2657_v12  ;;  %v3222_v61 = vrot.slane %v3096_v33, 6  ;;  %v3790_v45 = vld [vmem:[%s7158_s17 + $0x65] sm:$0x1]  ;;  %v3098_v12 = vld [vmem:[%s7158_s17 + $0x24] sm:$0x1] }
  0xe5   : > { %6488 = vmatpush3.bf16.msra.mxu1 %v6487_v57  ;;  %6194 = vmatprep.mubr.msk.f32.mxu1 %vm6791_vm7, %v6792_v29  ;;  %v3105_v57 = vld [vmem:[%s7158_s17 + $0x5c] sm:$0x1]  ;;  %v3924_v27 = vrot.slane %v3790_v45, 4 }
  0xe6   : > { %6489 = vmatprep.subr.bf16.mxu1 %v6790_v0  ;;  %v3223_v23 = vsel %vm402_vm1, %v3222_v61, %v3221_v3  ;;  %v6499_v34 = vpack.c.bf16 %v7404_v58, %v7402_v53  ;;  %v3230_v3 = vrot.slane %v3100_v41, 2 }
  0xe7   : > { %v3225_v39 = vsel %vm405_vm2, %v3224_v19, %v3223_v23  ;;  %v3246_v19 = vrot.slane %v3109_v2, 1 }
  0xe8   : > { %6146 = vmatmul.mubr.f32.vlgmr.msra.gmra.mrb[0].mxu0 %v586_v10  ;;  %v1972_v10 = vand.u32 4294901760, %v7404_v58 }
  0xe9   : > { %6470 = vmatpush3.bf16.msra.mxu0 %v7249_v37  ;;  %6152 = vmatprep.mubr.msk.f32.mxu0 %vm6791_vm7, %v6792_v29  ;;  %v1965_v37 = vand.u32 4294901760, %v7402_v53 }
  0xea   : > { %6471 = vmatprep.subr.bf16.mxu0 %v6790_v0  ;;  %v1973_v17 = vsub.f32 %v7404_v58, %v1972_v10 }
  0xeb   : > { %v1966_v16 = vsub.f32 %v7402_v53, %v1965_v37 }
  0xec   : > { %6195 = vmatmul.mubr.f32.vlgmr.msra.gmra.mrb[0].mxu1 %v7271_v52  ;;  %v1974_v32 = vand.u32 4294901760, %v1973_v17 }
  0xed   : > { %6491 = vmatpush3.bf16.msra.mxu1 %v7252_v42  ;;  %6201 = vmatprep.mubr.msk.f32.mxu1 %vm6791_vm7, %v6792_v29  ;;  %v2650_v42 = vsub.f32 %v7392_v47, %v2649_v8  ;;  %v1967_v30 = vand.u32 4294901760, %v1966_v16  ;;  %v3106_v16 = vld [vmem:[%s7158_s17 + $0x64] sm:$0x1]  ;;  %v6505_v47 = vpack.c.bf16 %v1972_v10, %v1965_v37 }
  0xee   : > { %6510 = vmatprep.subr.bf16.mxu1 %v6790_v0 }
  0xef   : > { %v2651_v20 = vand.u32 4294901760, %v2650_v42  ;;  %v6496_v55 = vpack.c.bf16 %v1974_v32, %v1967_v30  ;;  %v3922_v42 = vrot.slane %v3789_v50, 5  ;;  %v3099_v30 = vld [vmem:[%s7158_s17 + $0x2c] sm:$0x1] }
  0xf0   : > { %6153 = vmatmul.mubr.f32.vlgmr.msra.gmra.mrb[0].mxu0 %v7278_v59  ;;  %v3107_v32 = vld [vmem:[%s7158_s17 + $0x6c] sm:$0x1]  ;;  %v3228_v50 = vrot.slane %v3099_v30, 3 }
  0xf1   : > { %6473 = vmatpush3.bf16.msra.mxu0 %v7223_v14  ;;  %6159 = vmatprep.mubr.msk.f32.mxu0 %vm6791_vm7, %v6792_v29  ;;  %v1954_v14 = vand.u32 4294901760, %v7422_v11  ;;  %v6514_v38 = vpack.c.bf16 %v2658_v21, %v2651_v20  ;;  %v3238_v20 = vrot.slane %v3105_v57, 5  ;;  %v3783_v21 = vld [vmem:[%s7158_s17 + $0x2d] sm:$0x1]  ;;  %v3242_v51 = vrot.slane %v3107_v32, 3 }
  0xf2   : > { %6492 = vmatprep.subr.bf16.mxu0 %v6790_v0 }
  0xf3   : > { %v1955_v36 = vsub.f32 %v7422_v11, %v1954_v14  ;;  %v3239_v40 = vsel %vm405_vm2, %v3238_v20, %v3237_v24  ;;  %v3872_v24 = vpop.trf.xlu1 }
  0xf4   : > { %6202 = vmatmul.mubr.f32.vlgmr.msra.gmra.mrb[0].mxu1 %v7271_v52  ;;  %v3918_v52 = vrot.slane %v3787_v22, 7  ;;  %v3910_v22 = vrot.slane %v3782_v43, 4 }
  0xf5   : > { %6512 = vmatpush3.bf16.msra.mxu1 %v7435_v13  ;;  %6250 = vmatprep.mubr.msk.f32.mxu1 %vm6791_vm7, %v6792_v29 }
  0xf6   : > { %6513 = vmatprep.subr.bf16.mxu1 %v6790_v0  ;;  %v3919_v60 = vsel %vm399_vm0, %v3918_v52, %v3786_v62  ;;  %v3226_v52 = vrot.slane %v3098_v12, 4  ;;  %v3792_v62 = vld [vmem:[%s7158_s17 + $0x75] sm:$0x1]  ;;  %v3911_v15 = vsel %vm408_vm3, %v3910_v22, %v3909_v26 }
  0xf7   : > { %v3921_v17 = vsel %vm402_vm1, %v3920_v54, %v3919_v60  ;;  %v3785_v54 = vld [vmem:[%s7158_s17 + $0x3d] sm:$0x1]  ;;  %v3928_v61 = vrot.slane %v3792_v62, 2 }
  0xf8   : > { %6160 = vmatmul.mubr.f32.vlgmr.msra.gmra.mrb[0].mxu0 %v7278_v59  ;;  %6251 = vmatmul.mubr.f32.vlgmr.msra.gmra.mrb[2].mxu1 %v2640_v35  ;;  %v1956_v59 = vand.u32 4294901760, %v1955_v36  ;;  %v3923_v33 = vsel %vm405_vm2, %v3922_v42, %v3921_v17  ;;  %v3240_v35 = vrot.slane %v3106_v16, 4  ;;  %v3784_v36 = vld [vmem:[%s7158_s17 + $0x35] sm:$0x1]  ;;  %v3227_v56 = vsel %vm408_vm3, %v3226_v52, %v3225_v39  ;;  %v3793_v60 = vld [vmem:[%s7158_s17 + $0x7d] sm:$0x1] }
  0xf9   : > { %6494 = vmatpush3.bf16.msra.mxu0 %v7455_v28  ;;  %6208 = vmatprep.mubr.msk.f32.mxu0 %vm6791_vm7, %v6792_v29  ;;  %v3925_v49 = vsel %vm408_vm3, %v3924_v27, %v3923_v33  ;;  %v3916_v45 = vrot.slane %v3785_v54, 1  ;;  %v3229_v5 = vsel %vm411_vm4, %v3228_v50, %v3227_v56  ;;  %v3930_v16 = vrot.slane %v3793_v60, 1  ;;  %v4463_v56 = vld [vmem:[%s7158_s17 + $0xe] sm:$0x1] }
  0xfa   : > { %6495 = vmatprep.subr.bf16.mxu0 %v6790_v0  ;;  %6515 = vmatpush3.bf16.msra.mxu1 %v6514_v38  ;;  %v3912_v38 = vrot.slane %v3783_v21, 3  ;;  %v3241_v57 = vsel %vm408_vm3, %v3240_v35, %v3239_v40  ;;  %v3927_v43 = vsel %vm411_vm4, %v3926_v31, %v3925_v49  ;;  %v3231_v20 = vsel %vm414_vm5, %v3230_v3, %v3229_v5  ;;  %v5154_v5 = vld [vmem:[%s7158_s17 + $0x47] sm:$0x1] }
  0xfb   : > { %6257 = vmatprep.mubr.msk.f32.mxu1 %vm6791_vm7, %v6792_v29  ;;  %6516 = vmatprep.subr.bf16.mxu1 %v6790_v0  ;;  %v3243_v42 = vsel %vm411_vm4, %v3242_v51, %v3241_v57  ;;  %v3929_v17 = vsel %vm414_vm5, %v3928_v61, %v3927_v43  ;;  %v3935_v33 = vsel %vm513_vm8, %v3872_v24, 0  ;;  %v5147_v51 = vld [vmem:[%s7158_s17 + $0xf] sm:$0x1]  ;;  %v4471_v57 = vld [vmem:[%s7158_s17 + $0x4e] sm:$0x1] }
  0xfc   : > { %6209 = vmatmul.mubr.f32.vlgmr.msra.gmra.mrb[2].mxu0 %v1956_v59  ;;  %v3913_v59 = vsel %vm411_vm4, %v3912_v38, %v3911_v15  ;;  %v3245_v21 = vsel %vm414_vm5, %v3244_v44, %v3243_v42  ;;  %v3931_v23 = vsel %vm417_vm6, %v3930_v16, %v3929_v17  ;;  %v7566_v8 = vand.u32 4294901760, %v3935_v33  ;;  %v5148_v61 = vld [vmem:[%s7158_s17 + $0x17] sm:$0x1]  ;;  %v4462_v42 = vld [vmem:[%s7158_s17 + $0x6] sm:$0x1] }
  0xfd   : > { %6497 = vmatpush3.bf16.msra.mxu0 %v6496_v55  ;;  %6215 = vmatprep.mubr.msk.f32.mxu0 %vm6791_vm7, %v6792_v29  ;;  %v3914_v55 = vrot.slane %v3784_v36, 2  ;;  %v3247_v27 = vsel %vm417_vm6, %v3246_v19, %v3245_v21  ;;  %v3941_v32 = vand.u32 4294901760, %v3931_v23  ;;  %v4588_v16 = vrot.slane %v4463_v56, 7  ;;  %v5157_v19 = vld [vmem:[%s7158_s17 + $0x5f] sm:$0x1] }
  0xfe   : > { %6498 = vmatprep.subr.bf16.mxu0 %v6790_v0  ;;  %v3257_v35 = vand.u32 4294901760, %v3247_v27  ;;  %v7582_v10 = vsub.f32 %v3935_v33, %v7566_v8  ;;  %v4602_v17 = vrot.slane %v4471_v57, 7  ;;  %v4470_v24 = vld [vmem:[%s7158_s17 + $0x46] sm:$0x1] }
  0xff   : > { %v3915_v12 = vsel %vm414_vm5, %v3914_v55, %v3913_v59  ;;  %v4464_v59 = vld [vmem:[%s7158_s17 + $0x16] sm:$0x1]  ;;  %v4589_v33 = vsel %vm399_vm0, %v4588_v16, %v4462_v42 }
 0x100   : > { %6258 = vmatmul.mubr.f32.vlgmr.msra.gmra.mrb[2].mxu1 %v7389_v46  ;;  %v3917_v22 = vsel %vm417_vm6, %v3916_v45, %v3915_v12  ;;  %v7576_v58 = vsub.f32 %v3247_v27, %v3257_v35  ;;  %v4006_v39 = vand.u32 4294901760, %v7582_v10  ;;  %v5146_v45 = vld [vmem:[%s7158_s17 + $0x7] sm:$0x1]  ;;  %v4472_v12 = vld [vmem:[%s7158_s17 + $0x56] sm:$0x1] }
 0x101   : > { %6518 = vmatpush3.bf16.msra.mxu1 %v6517_v18  ;;  %6264 = vmatprep.mubr.msk.f32.mxu1 %vm6791_vm7, %v6792_v29  ;;  %v3232_v18 = vrot.slane %v3101_v1, 1  ;;  %v3938_v30 = vand.u32 4294901760, %v3917_v22  ;;  %v5156_v1 = vld [vmem:[%s7158_s17 + $0x57] sm:$0x1]  ;;  %v4473_v27 = vld [vmem:[%s7158_s17 + $0x5e] sm:$0x1] }
 0x102   : > { %6519 = vmatprep.subr.bf16.mxu1 %v6790_v0  ;;  %v3340_v36 = vand.u32 4294901760, %v7576_v58  ;;  %v4007_v48 = vsub.f32 %v7582_v10, %v4006_v39  ;;  %v5288_v21 = vrot.slane %v5156_v1, 6  ;;  %v4467_v1 = vld [vmem:[%s7158_s17 + $0x2e] sm:$0x1] }
 0x103   : > { %v3233_v26 = vsel %vm417_vm6, %v3232_v18, %v3231_v20  ;;  %v7564_v4 = vsub.f32 %v3917_v22, %v3938_v30  ;;  %v7615_v31 = vpack.c.bf16 %v3941_v32, %v3938_v30  ;;  %v5149_v18 = vld [vmem:[%s7158_s17 + $0x1f] sm:$0x1]  ;;  %v5274_v20 = vrot.slane %v5148_v61, 6 }
 0x104   : > { %6216 = vmatmul.mubr.f32.vlgmr.msra.gmra.mrb[2].mxu0 %v7409_v7  ;;  %v3254_v52 = vand.u32 4294901760, %v3233_v26  ;;  %v3341_v15 = vsub.f32 %v7576_v58, %v3340_v36  ;;  %v4008_v2 = vand.u32 4294901760, %v4007_v48  ;;  %v4590_v30 = vrot.slane %v4464_v59, 6 }
 0x105   : > { %6500 = vmatpush3.bf16.msra.mxu0 %v6499_v34  ;;  %6222 = vmatprep.mubr.msk.f32.mxu0 %vm6791_vm7, %v6792_v29  ;;  %v3188_v34 = vpop.trf.xlu0  ;;  %v4017_v37 = vand.u32 4294901760, %v7564_v4 }
 0x106   : > { %6501 = vmatprep.subr.bf16.mxu0 %v6790_v0  ;;  %v3251_v63 = vsel %vm513_vm8, %v3188_v34, 0  ;;  %v7574_v53 = vsub.f32 %v3233_v26, %v3254_v52  ;;  %v3342_v55 = vand.u32 4294901760, %v3341_v15  ;;  %v7627_v60 = vpack.c.bf16 %v3257_v35, %v3254_v52  ;;  %v5150_v34 = vld [vmem:[%s7158_s17 + $0x27] sm:$0x1]  ;;  %v4466_v15 = vld [vmem:[%s7158_s17 + $0x26] sm:$0x1] }
 0x107   : > { %v4018_v38 = vsub.f32 %v7564_v4, %v4017_v37  ;;  %v5158_v52 = vld [vmem:[%s7158_s17 + $0x67] sm:$0x1]  ;;  %v5276_v35 = vrot.slane %v5149_v18, 5 }
 0x108   : > { %6265 = vmatmul.mubr.f32.vlgmr.msra.gmra.mrb[2].mxu1 %v7407_v6  ;;  %v7569_v6 = vsub.f32 %v3931_v23, %v3941_v32  ;;  %v4465_v23 = vld [vmem:[%s7158_s17 + $0x1e] sm:$0x1]  ;;  %v4604_v32 = vrot.slane %v4472_v12, 6  ;;  %v5292_v56 = vrot.slane %v5158_v52, 4 }
 0x109   : > { %6521 = vmatpush3.bf16.msra.mxu1 %v7435_v13  ;;  %6271 = vmatprep.mubr.msk.f32.mxu1 %vm6791_vm7, %v6792_v29  ;;  %v4019_v41 = vand.u32 4294901760, %v4018_v38  ;;  %v4592_v48 = vrot.slane %v4465_v23, 5 }
 0x10a   : > { %6522 = vmatprep.subr.bf16.mxu1 %v6790_v0 }
 0x10c   : > { %6223 = vmatmul.mubr.f32.vlgmr.msra.gmra.mrb[2].mxu0 %v7422_v11  ;;  %v4024_v11 = vand.u32 4294901760, %v7569_v6 }
 0x10d   : > { %6503 = vmatpush3.bf16.msra.mxu0 %v7455_v28  ;;  %6229 = vmatprep.mubr.msk.f32.mxu0 %vm6791_vm7, %v6792_v29 }
 0x10e   : > { %6504 = vmatprep.subr.bf16.mxu0 %v6790_v0 }
 0x110   : > { %6272 = vmatmul.mubr.f32.vlgmr.msra.gmra.mrb[2].mxu1 %v2638_v9  ;;  %v7584_v9 = vand.u32 4294901760, %v3251_v63 }
 0x111   : > { %6524 = vmatpush3.bf16.msra.mxu1 %v6523_v25  ;;  %6278 = vmatprep.mubr.msk.f32.mxu1 %vm6791_vm7, %v6792_v29 }
 0x112   : > { %6525 = vmatprep.subr.bf16.mxu1 %v6790_v0  ;;  %v7599_v40 = vsub.f32 %v3251_v63, %v7584_v9  ;;  %v4603_v63 = vsel %vm399_vm0, %v4602_v17, %v4470_v24  ;;  %v5153_v24 = vld [vmem:[%s7158_s17 + $0x3f] sm:$0x1] }
 0x113   : > { %v4605_v57 = vsel %vm402_vm1, %v4604_v32, %v4603_v63 }
 0x114   : > { %6230 = vmatmul.mubr.f32.vlgmr.msra.gmra.mrb[2].mxu0 %v1954_v14  ;;  %v3333_v14 = vand.u32 4294901760, %v7574_v53  ;;  %v3322_v49 = vand.u32 4294901760, %v7599_v40 }
 0x115   : > { %6506 = vmatpush3.bf16.msra.mxu0 %v6505_v47  ;;  %6236 = vmatprep.mubr.msk.f32.mxu0 %vm6791_vm7, %v6792_v29  ;;  %v5290_v47 = vrot.slane %v5157_v19, 5  ;;  %v4468_v19 = vld [vmem:[%s7158_s17 + $0x36] sm:$0x1] }
 0x116   : > { %6507 = vmatprep.subr.bf16.mxu0 %v6790_v0  ;;  %v3334_v62 = vsub.f32 %v7574_v53, %v3333_v14  ;;  %v3323_v3 = vsub.f32 %v7599_v40, %v3322_v49  ;;  %v4598_v52 = vrot.slane %v4468_v19, 2 }
 0x118   : > { %6279 = vmatmul.mubr.f32.vlgmr.msra.gmra.mrb[2].mxu1 %v7389_v46  ;;  %v3335_v54 = vand.u32 4294901760, %v3334_v62  ;;  %v3324_v26 = vand.u32 4294901760, %v3323_v3  ;;  %v6553_v62 = vpack.c.bf16 %v7569_v6, %v7564_v4  ;;  %v6535_v3 = vpack.c.bf16 %v7576_v58, %v7574_v53 }
 0x119   : > { %6527 = vmatpush3.bf16.msra.mxu1 %v7435_v13  ;;  %6285 = vmatprep.mubr.msk.f32.mxu1 %vm6791_vm7, %v6792_v29  ;;  %v4025_v13 = vsub.f32 %v7569_v6, %v4024_v11  ;;  %v6541_v4 = vpack.c.bf16 %v3340_v36, %v3333_v14 }
 0x11a   : > { %6546 = vmatprep.subr.bf16.mxu1 %v6790_v0  ;;  %v6532_v22 = vpack.c.bf16 %v3342_v55, %v3335_v54  ;;  %v5159_v54 = vld [vmem:[%s7158_s17 + $0x6f] sm:$0x1]  ;;  %v5278_v55 = vrot.slane %v5150_v34, 4  ;;  %v4477_v34 = vld [vmem:[%s7158_s17 + $0x7e] sm:$0x1] }
 0x11b   : > { %v4026_v50 = vand.u32 4294901760, %v4025_v13  ;;  %v5294_v12 = vrot.slane %v5159_v54, 3 }
 0x11c   : > { %6237 = vmatmul.mubr.f32.vlgmr.msra.gmra.mrb[2].mxu0 %v7409_v7 }
 0x11d   : > { %6509 = vmatpush3.bf16.msra.mxu0 %v7455_v28  ;;  %6243 = vmatprep.mubr.msk.f32.mxu0 %vm6791_vm7, %v6792_v29  ;;  %v5155_v28 = vld [vmem:[%s7158_s17 + $0x4f] sm:$0x1]  ;;  %v6550_v44 = vpack.c.bf16 %v4026_v50, %v4019_v41  ;;  %v4474_v41 = vld [vmem:[%s7158_s17 + $0x66] sm:$0x1]  ;;  %v4606_v50 = vrot.slane %v4473_v27, 5 }
 0x11e   : > { %6528 = vmatprep.subr.bf16.mxu0 %v6790_v0  ;;  %v5286_v43 = vrot.slane %v5155_v28, 7  ;;  %v5151_v28 = vld [vmem:[%s7158_s17 + $0x2f] sm:$0x1] }
 0x11f   : > { %v5280_v42 = vrot.slane %v5151_v28, 3  ;;  %v4607_v16 = vsel %vm405_vm2, %v4606_v50, %v4605_v57 }
 0x120   : > { %6286 = vmatmul.mubr.f32.vlgmr.msra.gmra.mrb[2].mxu1 %v7389_v46  ;;  %v5272_v46 = vrot.slane %v5147_v51, 7  ;;  %v4591_v51 = vsel %vm402_vm1, %v4590_v30, %v4589_v33  ;;  %v4469_v33 = vld [vmem:[%s7158_s17 + $0x3e] sm:$0x1] }
 0x121   : > { %6548 = vmatpush3.bf16.msra.mxu1 %v7615_v31  ;;  %6334 = vmatprep.mubr.msk.f32.mxu1 %vm6791_vm7, %v6792_v29 }
 0x122   : > { %6549 = vmatprep.subr.bf16.mxu1 %v6790_v0  ;;  %v5273_v25 = vsel %vm399_vm0, %v5272_v46, %v5146_v45  ;;  %v4475_v46 = vld [vmem:[%s7158_s17 + $0x6e] sm:$0x1]  ;;  %v5152_v45 = vld [vmem:[%s7158_s17 + $0x37] sm:$0x1] }
 0x123   : > { %v5275_v38 = vsel %vm402_vm1, %v5274_v20, %v5273_v25  ;;  %v4476_v20 = vld [vmem:[%s7158_s17 + $0x76] sm:$0x1]  ;;  %v5161_v25 = vld [vmem:[%s7158_s17 + $0x7f] sm:$0x1] }
 0x124   : > { %6244 = vmatmul.mubr.f32.vlgmr.msra.gmra.mrb[2].mxu0 %v7409_v7  ;;  %6335 = vmatmul.mubr.f32.vlgmr.msra.gmra.mrb[4].mxu1 %v4008_v2  ;;  %v5287_v7 = vsel %vm399_vm0, %v5286_v43, %v5154_v5  ;;  %v5277_v59 = vsel %vm405_vm2, %v5276_v35, %v5275_v38  ;;  %v4594_v43 = vrot.slane %v4466_v15, 4  ;;  %v4608_v2 = vrot.slane %v4474_v41, 4  ;;  %v5160_v5 = vld [vmem:[%s7158_s17 + $0x77] sm:$0x1] }
 0x125   : > { %6530 = vmatpush3.bf16.msra.mxu0 %v7627_v60  ;;  %6292 = vmatprep.mubr.msk.f32.mxu0 %vm6791_vm7, %v6792_v29  ;;  %v5289_v13 = vsel %vm402_vm1, %v5288_v21, %v5287_v7  ;;  %v5279_v17 = vsel %vm408_vm3, %v5278_v55, %v5277_v59  ;;  %v4596_v21 = vrot.slane %v4467_v1, 3  ;;  %v5282_v7 = vrot.slane %v5152_v45, 2  ;;  %v5240_v55 = vpop.trf.xlu1 }
 0x126   : > { %6531 = vmatprep.subr.bf16.mxu0 %v6790_v0  ;;  %6551 = vmatpush3.bf16.msra.mxu1 %v6550_v44  ;;  %v5291_v61 = vsel %vm405_vm2, %v5290_v47, %v5289_v13  ;;  %v4593_v44 = vsel %vm405_vm2, %v4592_v48, %v4591_v51  ;;  %v4609_v27 = vsel %vm408_vm3, %v4608_v2, %v4607_v16  ;;  %v4612_v35 = vrot.slane %v4476_v20, 2 }
 0x127   : > { %6341 = vmatprep.mubr.msk.f32.mxu1 %vm6791_vm7, %v6792_v29  ;;  %6552 = vmatprep.subr.bf16.mxu1 %v6790_v0  ;;  %v5293_v18 = vsel %vm408_vm3, %v5292_v56, %v5291_v61  ;;  %v4595_v23 = vsel %vm408_vm3, %v4594_v43, %v4593_v44  ;;  %v5281_v30 = vsel %vm411_vm4, %v5280_v42, %v5279_v17  ;;  %v5284_v47 = vrot.slane %v5153_v24, 1  ;;  %v4556_v43 = vpop.trf.xlu0 }
 0x128   : > { %6293 = vmatmul.mubr.f32.vlgmr.msra.gmra.mrb[4].mxu0 %v3324_v26  ;;  %v5296_v26 = vrot.slane %v5160_v5, 2  ;;  %v5295_v32 = vsel %vm411_vm4, %v5294_v12, %v5293_v18  ;;  %v5298_v63 = vrot.slane %v5161_v25, 1  ;;  %v4597_v38 = vsel %vm411_vm4, %v4596_v21, %v4595_v23 }
 0x129   : > { %6533 = vmatpush3.bf16.msra.mxu0 %v6532_v22  ;;  %6299 = vmatprep.mubr.msk.f32.mxu0 %vm6791_vm7, %v6792_v29  ;;  %v4610_v22 = vrot.slane %v4475_v46, 3  ;;  %v4600_v41 = vrot.slane %v4469_v33, 1  ;;  %v4614_v48 = vrot.slane %v4477_v34, 1  ;;  %v4599_v50 = vsel %vm414_vm5, %v4598_v52, %v4597_v38 }
 0x12a   : > { %6534 = vmatprep.subr.bf16.mxu0 %v6790_v0  ;;  %v5297_v15 = vsel %vm414_vm5, %v5296_v26, %v5295_v32  ;;  %v6559_v56 = vpack.c.bf16 %v4024_v11, %v4017_v37  ;;  %v5303_v46 = vsel %vm513_vm8, %v5240_v55, 0  ;;  %v6793_v33 = vmov 1966171168  }
 0x12b   : > { %v4611_v13 = vsel %vm411_vm4, %v4610_v22, %v4609_v27  ;;  %v5299_v54 = vsel %vm417_vm6, %v5298_v63, %v5297_v15  ;;  %v4601_v57 = vsel %vm417_vm6, %v4600_v41, %v4599_v50  ;;  %v7738_v11 = vand.u32 4294901760, %v5303_v46 }
 0x12c   : > { %6342 = vmatmul.mubr.f32.vlgmr.msra.gmra.mrb[4].mxu1 %v7566_v8  ;;  %v4613_v51 = vsel %vm414_vm5, %v4612_v35, %v4611_v13  ;;  %v5309_v1 = vand.u32 4294901760, %v5299_v54  ;;  %v4622_v6 = vand.u32 4294901760, %v4601_v57  ;;  %v979_v34 = vunpack.c.l.s4 %v6793_v33 }
 0x12d   : > { %6554 = vmatpush3.bf16.msra.mxu1 %v6553_v62  ;;  %6348 = vmatprep.mubr.msk.f32.mxu1 %vm6791_vm7, %v6792_v29  ;;  %v5283_v62 = vsel %vm414_vm5, %v5282_v7, %v5281_v30  ;;  %v4615_v59 = vsel %vm417_vm6, %v4614_v48, %v4613_v51  ;;  %v7755_v14 = vsub.f32 %v5303_v46, %v7738_v11  ;;  %v981_v52 = vlaneseq }
 0x12e   : > { %6555 = vmatprep.subr.bf16.mxu1 %v6790_v0  ;;  %v5285_v28 = vsel %vm417_vm6, %v5284_v47, %v5283_v62  ;;  %v4625_v37 = vand.u32 4294901760, %v4615_v59  ;;  %v7750_v53 = vsub.f32 %v4601_v57, %v4622_v6 }
 0x12f   : > { %v5306_v61 = vand.u32 4294901760, %v5285_v28  ;;  %v5374_v45 = vand.u32 4294901760, %v7755_v14  ;;  %v982_v35 = vshrl.u32 %v981_v52, 7 }
 0x130   : > { %6300 = vmatmul.mubr.f32.vlgmr.msra.gmra.mrb[4].mxu0 %v7584_v9  ;;  %v7752_v58 = vsub.f32 %v4615_v59, %v4625_v37  ;;  %v6565_v22 = vpack.c.bf16 %v4625_v37, %v4622_v6 }
 0x131   : > { %6536 = vmatpush3.bf16.msra.mxu0 %v6535_v3  ;;  %6306 = vmatprep.mubr.msk.f32.mxu0 %vm6791_vm7, %v6792_v29  ;;  %v7741_v2 = vsub.f32 %v5285_v28, %v5306_v61  ;;  %v6583_v12 = vpack.c.bf16 %v5309_v1, %v5306_v61  ;;  %v5375_v18 = vsub.f32 %v7755_v14, %v5374_v45 }
 0x132   : > { %6537 = vmatprep.subr.bf16.mxu0 %v6790_v0  ;;  %v4708_v44 = vand.u32 4294901760, %v7752_v58  ;;  %v6571_v27 = vpack.c.bf16 %v7752_v58, %v7750_v53 }
 0x133   : > { %v5385_v3 = vand.u32 4294901760, %v7741_v2  ;;  %v5376_v24 = vand.u32 4294901760, %v5375_v18 }
 0x134   : > { %6349 = vmatmul.mubr.f32.vlgmr.msra.gmra.mrb[4].mxu1 %v7582_v10  ;;  %v7743_v10 = vsub.f32 %v5299_v54, %v5309_v1  ;;  %v4709_v17 = vsub.f32 %v7752_v58, %v4708_v44 }
 0x135   : > { %6557 = vmatpush3.bf16.msra.mxu1 %v7615_v31  ;;  %6355 = vmatprep.mubr.msk.f32.mxu1 %vm6791_vm7, %v6792_v29  ;;  %v5386_v42 = vsub.f32 %v7741_v2, %v5385_v3 }
 0x136   : > { %6558 = vmatprep.subr.bf16.mxu1 %v6790_v0  ;;  %v4710_v23 = vand.u32 4294901760, %v4709_v17 }
 0x137   : > { %v5387_v20 = vand.u32 4294901760, %v5386_v42 }
 0x138   : > { %6307 = vmatmul.mubr.f32.vlgmr.msra.gmra.mrb[4].mxu0 %v7599_v40  ;;  %v5392_v40 = vand.u32 4294901760, %v7743_v10 }
 0x139   : > { %6539 = vmatpush3.bf16.msra.mxu0 %v7627_v60  ;;  %6313 = vmatprep.mubr.msk.f32.mxu0 %vm6791_vm7, %v6792_v29 }
 0x13a   : > { %6540 = vmatprep.subr.bf16.mxu0 %v6790_v0  ;;  %v6595_v30 = vpack.c.bf16 %v5392_v40, %v5385_v3 }
 0x13c   : > { %6356 = vmatmul.mubr.f32.vlgmr.msra.gmra.mrb[4].mxu1 %v4006_v39  ;;  %v4619_v39 = vsel %vm513_vm8, %v4556_v43, 0 }
 0x13d   : > { %6560 = vmatpush3.bf16.msra.mxu1 %v6559_v56  ;;  %6362 = vmatprep.mubr.msk.f32.mxu1 %vm6791_vm7, %v6792_v29  ;;  %v7757_v36 = vand.u32 4294901760, %v4619_v39 }
 0x13e   : > { %6561 = vmatprep.subr.bf16.mxu1 %v6790_v0 }
 0x13f   : > { %v7770_v5 = vsub.f32 %v4619_v39, %v7757_v36 }
 0x140   : > { %6314 = vmatmul.mubr.f32.vlgmr.msra.gmra.mrb[4].mxu0 %v3322_v49  ;;  %v4701_v49 = vand.u32 4294901760, %v7750_v53 }
 0x141   : > { %6542 = vmatpush3.bf16.msra.mxu0 %v6541_v4  ;;  %6320 = vmatprep.mubr.msk.f32.mxu0 %vm6791_vm7, %v6792_v29  ;;  %v4690_v19 = vand.u32 4294901760, %v7770_v5 }
 0x142   : > { %6543 = vmatprep.subr.bf16.mxu0 %v6790_v0  ;;  %v4702_v16 = vsub.f32 %v7750_v53, %v4701_v49  ;;  %v6577_v32 = vpack.c.bf16 %v4708_v44, %v4701_v49 }
 0x143   : > { %v4691_v25 = vsub.f32 %v7770_v5, %v4690_v19 }
 0x144   : > { %6363 = vmatmul.mubr.f32.vlgmr.msra.gmra.mrb[4].mxu1 %v7566_v8 }
 0x145   : > { %6563 = vmatpush3.bf16.msra.mxu1 %v7615_v31  ;;  %6369 = vmatprep.mubr.msk.f32.mxu1 %vm6791_vm7, %v6792_v29  ;;  %v5393_v31 = vsub.f32 %v7743_v10, %v5392_v40  ;;  %v4692_v26 = vand.u32 4294901760, %v4691_v25 }
 0x146   : > { %6582 = vmatprep.subr.bf16.mxu1 %v6790_v0 }
 0x147   : > { %v5394_v21 = vand.u32 4294901760, %v5393_v31 }
 0x148   : > { %6321 = vmatmul.mubr.f32.vlgmr.msra.gmra.mrb[4].mxu0 %v7584_v9 }
 0x149   : > { %6545 = vmatpush3.bf16.msra.mxu0 %v7627_v60  ;;  %6327 = vmatprep.mubr.msk.f32.mxu0 %vm6791_vm7, %v6792_v29  ;;  %v4703_v60 = vand.u32 4294901760, %v4702_v16  ;;  %v6586_v7 = vpack.c.bf16 %v5394_v21, %v5387_v20 }
 0x14a   : > { %6564 = vmatprep.subr.bf16.mxu0 %v6790_v0 }
 0x14c   : > { %6370 = vmatmul.mubr.f32.vlgmr.msra.gmra.mrb[4].mxu1 %v7566_v8  ;;  %v6568_v8 = vpack.c.bf16 %v4710_v23, %v4703_v60 }
 0x14d   : > { %6584 = vmatpush3.bf16.msra.mxu1 %v6583_v12  ;;  %6418 = vmatprep.mubr.msk.f32.mxu1 %vm6791_vm7, %v6792_v29 }
 0x14e   : > { %6585 = vmatprep.subr.bf16.mxu1 %v6790_v0 }
 0x150   : > { %6328 = vmatmul.mubr.f32.vlgmr.msra.gmra.mrb[4].mxu0 %v7584_v9  ;;  %6419 = vmatmul.mubr.f32.vlgmr.msra.gmra.mrb[6].mxu1 %v5376_v24  ;;  %v6589_v9 = vpack.c.bf16 %v7743_v10, %v7741_v2 }
 0x151   : > { %6566 = vmatpush3.bf16.msra.mxu0 %v6565_v22  ;;  %6376 = vmatprep.mubr.msk.f32.mxu0 %vm6791_vm7, %v6792_v29 }
 0x152   : > { %6567 = vmatprep.subr.bf16.mxu0 %v6790_v0  ;;  %6587 = vmatpush3.bf16.msra.mxu1 %v6586_v7 }
 0x153   : > { %6425 = vmatprep.mubr.msk.f32.mxu1 %vm6791_vm7, %v6792_v29  ;;  %6588 = vmatprep.subr.bf16.mxu1 %v6790_v0 }
 0x154   : > { %6377 = vmatmul.mubr.f32.vlgmr.msra.gmra.mrb[6].mxu0 %v4692_v26 }
 0x155   : > { %6569 = vmatpush3.bf16.msra.mxu0 %v6568_v8  ;;  %6383 = vmatprep.mubr.msk.f32.mxu0 %vm6791_vm7, %v6792_v29 }
 0x156   : > { %6570 = vmatprep.subr.bf16.mxu0 %v6790_v0 }
 0x158   : > { %6426 = vmatmul.mubr.f32.vlgmr.msra.gmra.mrb[6].mxu1 %v7738_v11 }
 0x159   : > { %6590 = vmatpush3.bf16.msra.mxu1 %v6589_v9  ;;  %6432 = vmatprep.mubr.msk.f32.mxu1 %vm6791_vm7, %v6792_v29 }
 0x15a   : > { %6591 = vmatprep.subr.bf16.mxu1 %v6790_v0 }
 0x15c   : > { %6384 = vmatmul.mubr.f32.vlgmr.msra.gmra.mrb[6].mxu0 %v7757_v36 }
 0x15d   : > { %6572 = vmatpush3.bf16.msra.mxu0 %v6571_v27  ;;  %6390 = vmatprep.mubr.msk.f32.mxu0 %vm6791_vm7, %v6792_v29 }
 0x15e   : > { %6573 = vmatprep.subr.bf16.mxu0 %v6790_v0 }
 0x160   : > { %6433 = vmatmul.mubr.f32.vlgmr.msra.gmra.mrb[6].mxu1 %v7755_v14 }
 0x161   : > { %6593 = vmatpush3.bf16.msra.mxu1 %v6583_v12  ;;  %6439 = vmatprep.mubr.msk.f32.mxu1 %vm6791_vm7, %v6792_v29 }
 0x162   : > { %6594 = vmatprep.subr.bf16.mxu1 %v6790_v0 }
 0x164   : > { %6391 = vmatmul.mubr.f32.vlgmr.msra.gmra.mrb[6].mxu0 %v7770_v5 }
 0x165   : > { %6575 = vmatpush3.bf16.msra.mxu0 %v6565_v22  ;;  %6397 = vmatprep.mubr.msk.f32.mxu0 %vm6791_vm7, %v6792_v29 }
 0x166   : > { %6576 = vmatprep.subr.bf16.mxu0 %v6790_v0 }
 0x168   : > { %6440 = vmatmul.mubr.f32.vlgmr.msra.gmra.mrb[6].mxu1 %v5374_v45 }
 0x169   : > { %6596 = vmatpush3.bf16.msra.mxu1 %v6595_v30  ;;  %6446 = vmatprep.mubr.msk.f32.mxu1 %vm6791_vm7, %v6792_v29 }
 0x16a   : > { %6597 = vmatprep.subr.bf16.mxu1 %v6790_v0 }
 0x16c   : > { %6398 = vmatmul.mubr.f32.vlgmr.msra.gmra.mrb[6].mxu0 %v4690_v19 }
 0x16d   : > { %6578 = vmatpush3.bf16.msra.mxu0 %v6577_v32  ;;  %6404 = vmatprep.mubr.msk.f32.mxu0 %vm6791_vm7, %v6792_v29 }
 0x16e   : > { %6579 = vmatprep.subr.bf16.mxu0 %v6790_v0  ;;  %v980_v0 = vunpack.c.0.s8 %v979_v34 }
 0x170   : > { %6447 = vmatmul.mubr.f32.vlgmr.msra.gmra.mrb[6].mxu1 %v7738_v11  ;;  %v7842_v47 = vsub.s32 %v980_v0, %v982_v35 }
 0x171   : > { %6599 = vmatpush3.bf16.msra.mxu1 %v6583_v12  ;;  %6453 = vmatprep.mubr.msk.f32.mxu1 %vm6791_vm7, %v6792_v29 }
 0x174   : > { %6405 = vmatmul.mubr.f32.vlgmr.msra.gmra.mrb[6].mxu0 %v7757_v36 }
 0x175   : > { %6581 = vmatpush3.bf16.msra.mxu0 %v6565_v22  ;;  %6411 = vmatprep.mubr.msk.f32.mxu0 %vm6791_vm7, %v6792_v29 }
 0x178   : > { %6454 = vmatmul.mubr.f32.vlgmr.msra.gmra.mrb[6].mxu1 %v7738_v11 }
 0x17c   : > { %6412 = vmatmul.mubr.f32.vlgmr.msra.gmra.mrb[6].mxu0 %v7757_v36 }
 0x1c7   : > { %v1656_v63 = vpop.f32.mrb[0].mxu1 }
 0x1c8   : > { %v1661_v38 = vcombine.high %v1656_v63, %v1656_v63  ;;  %v1668_v13 = vrot.slane %v1656_v63, %v7842_v47  ;;  %v6203_v62 = vpop.f32.mrb[1].mxu1 }
 0x1ca   : > { %v1675_v15 = vrot.slane %v1661_v38, %v7842_v47  ;;  %v1676_v29 = vcombine.high %v1668_v13, %v1668_v13  ;;  %v1684_v41 = vrot.slane %v1668_v13, %v7842_v47  ;;  %5944 = vst.sshfl [vmem:[%s7847_s22 + $0x1] sm:$0x1 pattern:$0x73625140] %v1668_v13 }
 0x1cb   : > { %v972_v48 = vpop.f32.mrb[0].mxu0 }
 0x1cc   : > { %v977_v50 = vcombine.high %v972_v48, %v972_v48  ;;  %v984_v51 = vrot.slane %v972_v48, %v7842_v47  ;;  %v1677_v28 = vcombine.high %v1675_v15, %v1675_v15  ;;  %v1691_v54 = vrot.slane %v1675_v15, %v7842_v47  ;;  %5945 = vst.sshfl [vmem:[%s7847_s22 + $0x9] sm:$0x1 pattern:$0x73625140] %v1676_v29  ;;  %v6161_v55 = vpop.f32.mrb[1].mxu0 }
 0x1cd   : > { %5946 = vst.sshfl [vmem:[%s7847_s22 + $0x21] sm:$0x1 pattern:$0x73625140] %v1675_v15  ;;  %v1698_v56 = vrot.slane %v1676_v29, %v7842_v47  ;;  %v1706_v57 = vcombine.high %v1684_v41, %v1684_v41 }
 0x1ce   : > { %v991_v59 = vrot.slane %v977_v50, %v7842_v47  ;;  %v992_v61 = vcombine.high %v984_v51, %v984_v51  ;;  %v1000_v1 = vrot.slane %v984_v51, %v7842_v47  ;;  %5940 = vst.sshfl [vmem:[%s7847_s22] sm:$0x1 pattern:$0x73625140] %v984_v51  ;;  %v1705_v46 = vrot.slane %v1677_v28, %v7842_v47 }
 0x1cf   : > { %5947 = vst.sshfl [vmem:[%s7847_s22 + $0x29] sm:$0x1 pattern:$0x73625140] %v1677_v28  ;;  %v1707_v43 = vcombine.high %v1691_v54, %v1691_v54  ;;  %v1708_v4 = vcombine.high %v1698_v56, %v1698_v56  ;;  %1720 = vst [vmem:[%s7847_s22 + $0x11] sm:$0x1] %v1706_v57 }
 0x1d0   : > { %v993_v6 = vcombine.high %v991_v59, %v991_v59  ;;  %v1007_v37 = vrot.slane %v991_v59, %v7842_v47  ;;  %v1014_v11 = vrot.slane %v992_v61, %v7842_v47  ;;  %v1022_v2 = vcombine.high %v1000_v1, %v1000_v1  ;;  %5941 = vst.sshfl [vmem:[%s7847_s22 + $0x8] sm:$0x1 pattern:$0x73625140] %v992_v61 }
 0x1d1   : > { %5942 = vst.sshfl [vmem:[%s7847_s22 + $0x20] sm:$0x1 pattern:$0x73625140] %v991_v59  ;;  %v1709_v10 = vcombine.high %v1705_v46, %v1705_v46  ;;  %1721 = vst [vmem:[%s7847_s22 + $0x19] sm:$0x1] %v1708_v4 }
 0x1d2   : > { %1724 = vst [vmem:[%s7847_s22 + $0x31] sm:$0x1] %v1707_v43  ;;  %v1021_v39 = vrot.slane %v993_v6, %v7842_v47  ;;  %v1023_v53 = vcombine.high %v1007_v37, %v1007_v37  ;;  %v1024_v58 = vcombine.high %v1014_v11, %v1014_v11  ;;  %1036 = vst [vmem:[%s7847_s22 + $0x10] sm:$0x1] %v1022_v2 }
 0x1d3   : > { %5943 = vst.sshfl [vmem:[%s7847_s22 + $0x28] sm:$0x1 pattern:$0x73625140] %v993_v6  ;;  %1725 = vst [vmem:[%s7847_s22 + $0x39] sm:$0x1] %v1709_v10 }
 0x1d4   : > { %v1025_v14 = vcombine.high %v1021_v39, %v1021_v39  ;;  %1037 = vst [vmem:[%s7847_s22 + $0x18] sm:$0x1] %v1024_v58  ;;  %1040 = vst [vmem:[%s7847_s22 + $0x30] sm:$0x1] %v1023_v53 }
 0x1d6   : > { %1041 = vst [vmem:[%s7847_s22 + $0x38] sm:$0x1] %v1025_v14 }
 0x1f3   : > { %v3024_v36 = vpop.f32.mrb[2].mxu1 }
 0x1f4   : > { %v3029_v3 = vcombine.high %v3024_v36, %v3024_v36  ;;  %v3036_v40 = vrot.slane %v3024_v36, %v7842_v47  ;;  %v6287_v49 = vpop.f32.mrb[3].mxu1 }
 0x1f6   : > { %v3043_v44 = vrot.slane %v3029_v3, %v7842_v47  ;;  %v3044_v45 = vcombine.high %v3036_v40, %v3036_v40  ;;  %v3052_v5 = vrot.slane %v3036_v40, %v7842_v47  ;;  %5952 = vst.sshfl [vmem:[%s7847_s22 + $0x3] sm:$0x1 pattern:$0x73625140] %v3036_v40 }
 0x1f7   : > { %v2340_v42 = vpop.f32.mrb[2].mxu0 }
 0x1f8   : > { %v2345_v31 = vcombine.high %v2340_v42, %v2340_v42  ;;  %v2352_v12 = vrot.slane %v2340_v42, %v7842_v47  ;;  %v3045_v16 = vcombine.high %v3043_v44, %v3043_v44  ;;  %v3059_v17 = vrot.slane %v3043_v44, %v7842_v47  ;;  %5953 = vst.sshfl [vmem:[%s7847_s22 + $0xb] sm:$0x1 pattern:$0x73625140] %v3044_v45  ;;  %v6245_v18 = vpop.f32.mrb[3].mxu0 }
 0x1f9   : > { %5954 = vst.sshfl [vmem:[%s7847_s22 + $0x23] sm:$0x1 pattern:$0x73625140] %v3043_v44  ;;  %v3066_v19 = vrot.slane %v3044_v45, %v7842_v47  ;;  %v3074_v20 = vcombine.high %v3052_v5, %v3052_v5 }
 0x1fa   : > { %v2359_v21 = vrot.slane %v2345_v31, %v7842_v47  ;;  %v2360_v22 = vcombine.high %v2352_v12, %v2352_v12  ;;  %v2368_v60 = vrot.slane %v2352_v12, %v7842_v47  ;;  %5948 = vst.sshfl [vmem:[%s7847_s22 + $0x2] sm:$0x1 pattern:$0x73625140] %v2352_v12  ;;  %v3073_v23 = vrot.slane %v3045_v16, %v7842_v47 }
 0x1fb   : > { %5955 = vst.sshfl [vmem:[%s7847_s22 + $0x2b] sm:$0x1 pattern:$0x73625140] %v3045_v16  ;;  %v3075_v24 = vcombine.high %v3059_v17, %v3059_v17  ;;  %v3076_v25 = vcombine.high %v3066_v19, %v3066_v19  ;;  %3088 = vst [vmem:[%s7847_s22 + $0x13] sm:$0x1] %v3074_v20 }
 0x1fc   : > { %v2361_v7 = vcombine.high %v2359_v21, %v2359_v21  ;;  %v2375_v8 = vrot.slane %v2359_v21, %v7842_v47  ;;  %v2382_v26 = vrot.slane %v2360_v22, %v7842_v47  ;;  %v2390_v9 = vcombine.high %v2368_v60, %v2368_v60  ;;  %5949 = vst.sshfl [vmem:[%s7847_s22 + $0xa] sm:$0x1 pattern:$0x73625140] %v2360_v22 }
 0x1fd   : > { %5950 = vst.sshfl [vmem:[%s7847_s22 + $0x22] sm:$0x1 pattern:$0x73625140] %v2359_v21  ;;  %v3077_v27 = vcombine.high %v3073_v23, %v3073_v23  ;;  %3089 = vst [vmem:[%s7847_s22 + $0x1b] sm:$0x1] %v3076_v25 }
 0x1fe   : > { %3092 = vst [vmem:[%s7847_s22 + $0x33] sm:$0x1] %v3075_v24  ;;  %v2389_v30 = vrot.slane %v2361_v7, %v7842_v47  ;;  %v2391_v32 = vcombine.high %v2375_v8, %v2375_v8  ;;  %v2392_v33 = vcombine.high %v2382_v26, %v2382_v26  ;;  %2404 = vst [vmem:[%s7847_s22 + $0x12] sm:$0x1] %v2390_v9 }
 0x1ff   : > { %5951 = vst.sshfl [vmem:[%s7847_s22 + $0x2a] sm:$0x1 pattern:$0x73625140] %v2361_v7  ;;  %3093 = vst [vmem:[%s7847_s22 + $0x3b] sm:$0x1] %v3077_v27 }
 0x200   : > { %v2393_v34 = vcombine.high %v2389_v30, %v2389_v30  ;;  %2405 = vst [vmem:[%s7847_s22 + $0x1a] sm:$0x1] %v2392_v33  ;;  %2408 = vst [vmem:[%s7847_s22 + $0x32] sm:$0x1] %v2391_v32 }
 0x202   : > { %2409 = vst [vmem:[%s7847_s22 + $0x3a] sm:$0x1] %v2393_v34 }
 0x21f   : > { %v4392_v52 = vpop.f32.mrb[4].mxu1 }
 0x220   : > { %v4397_v0 = vcombine.high %v4392_v52, %v4392_v52  ;;  %v4404_v35 = vrot.slane %v4392_v52, %v7842_v47  ;;  %v6371_v63 = vpop.f32.mrb[5].mxu1 }
 0x222   : > { %v4411_v38 = vrot.slane %v4397_v0, %v7842_v47  ;;  %v4412_v13 = vcombine.high %v4404_v35, %v4404_v35  ;;  %v4420_v62 = vrot.slane %v4404_v35, %v7842_v47  ;;  %5960 = vst.sshfl [vmem:[%s7847_s22 + $0x5] sm:$0x1 pattern:$0x73625140] %v4404_v35 }
 0x223   : > { %v3708_v15 = vpop.f32.mrb[4].mxu0 }
 0x224   : > { %v3713_v29 = vcombine.high %v3708_v15, %v3708_v15  ;;  %v3720_v41 = vrot.slane %v3708_v15, %v7842_v47  ;;  %v4413_v48 = vcombine.high %v4411_v38, %v4411_v38  ;;  %v4427_v50 = vrot.slane %v4411_v38, %v7842_v47  ;;  %5961 = vst.sshfl [vmem:[%s7847_s22 + $0xd] sm:$0x1 pattern:$0x73625140] %v4412_v13  ;;  %v6329_v51 = vpop.f32.mrb[5].mxu0 }
 0x225   : > { %5962 = vst.sshfl [vmem:[%s7847_s22 + $0x25] sm:$0x1 pattern:$0x73625140] %v4411_v38  ;;  %v4434_v28 = vrot.slane %v4412_v13, %v7842_v47  ;;  %v4442_v54 = vcombine.high %v4420_v62, %v4420_v62 }
 0x226   : > { %v3727_v55 = vrot.slane %v3713_v29, %v7842_v47  ;;  %v3728_v56 = vcombine.high %v3720_v41, %v3720_v41  ;;  %v3736_v57 = vrot.slane %v3720_v41, %v7842_v47  ;;  %5956 = vst.sshfl [vmem:[%s7847_s22 + $0x4] sm:$0x1 pattern:$0x73625140] %v3720_v41  ;;  %v4441_v59 = vrot.slane %v4413_v48, %v7842_v47 }
 0x227   : > { %5963 = vst.sshfl [vmem:[%s7847_s22 + $0x2d] sm:$0x1 pattern:$0x73625140] %v4413_v48  ;;  %v4443_v61 = vcombine.high %v4427_v50, %v4427_v50  ;;  %v4444_v1 = vcombine.high %v4434_v28, %v4434_v28  ;;  %4456 = vst [vmem:[%s7847_s22 + $0x15] sm:$0x1] %v4442_v54 }
 0x228   : > { %v3729_v46 = vcombine.high %v3727_v55, %v3727_v55  ;;  %v3743_v43 = vrot.slane %v3727_v55, %v7842_v47  ;;  %v3750_v4 = vrot.slane %v3728_v56, %v7842_v47  ;;  %v3758_v6 = vcombine.high %v3736_v57, %v3736_v57  ;;  %5957 = vst.sshfl [vmem:[%s7847_s22 + $0xc] sm:$0x1 pattern:$0x73625140] %v3728_v56 }
 0x229   : > { %5958 = vst.sshfl [vmem:[%s7847_s22 + $0x24] sm:$0x1 pattern:$0x73625140] %v3727_v55  ;;  %v4445_v37 = vcombine.high %v4441_v59, %v4441_v59  ;;  %4457 = vst [vmem:[%s7847_s22 + $0x1d] sm:$0x1] %v4444_v1 }
 0x22a   : > { %4460 = vst [vmem:[%s7847_s22 + $0x35] sm:$0x1] %v4443_v61  ;;  %v3757_v11 = vrot.slane %v3729_v46, %v7842_v47  ;;  %v3759_v2 = vcombine.high %v3743_v43, %v3743_v43  ;;  %v3760_v10 = vcombine.high %v3750_v4, %v3750_v4  ;;  %3772 = vst [vmem:[%s7847_s22 + $0x14] sm:$0x1] %v3758_v6 }
 0x22b   : > { %5959 = vst.sshfl [vmem:[%s7847_s22 + $0x2c] sm:$0x1 pattern:$0x73625140] %v3729_v46  ;;  %4461 = vst [vmem:[%s7847_s22 + $0x3d] sm:$0x1] %v4445_v37 }
 0x22c   : > { %v3761_v39 = vcombine.high %v3757_v11, %v3757_v11  ;;  %3773 = vst [vmem:[%s7847_s22 + $0x1c] sm:$0x1] %v3760_v10  ;;  %3776 = vst [vmem:[%s7847_s22 + $0x34] sm:$0x1] %v3759_v2 }
 0x22e   : > { %3777 = vst [vmem:[%s7847_s22 + $0x3c] sm:$0x1] %v3761_v39 }
 0x24b   : > { %v5760_v53 = vpop.f32.mrb[6].mxu1 }
 0x24c   : > { %v5765_v58 = vcombine.high %v5760_v53, %v5760_v53  ;;  %v5772_v14 = vrot.slane %v5760_v53, %v7842_v47  ;;  %v6455_v36 = vpop.f32.mrb[7].mxu1 }
 0x24e   : > { %v5779_v3 = vrot.slane %v5765_v58, %v7842_v47  ;;  %v5780_v40 = vcombine.high %v5772_v14, %v5772_v14  ;;  %v5788_v49 = vrot.slane %v5772_v14, %v7842_v47  ;;  %5968 = vst.sshfl [vmem:[%s7847_s22 + $0x7] sm:$0x1 pattern:$0x73625140] %v5772_v14 }
 0x24f   : > { %v5076_v44 = vpop.f32.mrb[6].mxu0 }
 0x250   : > { %v5081_v45 = vcombine.high %v5076_v44, %v5076_v44  ;;  %v5088_v5 = vrot.slane %v5076_v44, %v7842_v47  ;;  %v5781_v42 = vcombine.high %v5779_v3, %v5779_v3  ;;  %v5795_v31 = vrot.slane %v5779_v3, %v7842_v47  ;;  %5969 = vst.sshfl [vmem:[%s7847_s22 + $0xf] sm:$0x1 pattern:$0x73625140] %v5780_v40  ;;  %v6413_v12 = vpop.f32.mrb[7].mxu0 }
 0x251   : > { %5970 = vst.sshfl [vmem:[%s7847_s22 + $0x27] sm:$0x1 pattern:$0x73625140] %v5779_v3  ;;  %v5802_v16 = vrot.slane %v5780_v40, %v7842_v47  ;;  %v5810_v17 = vcombine.high %v5788_v49, %v5788_v49 }
 0x252   : > { %v5095_v18 = vrot.slane %v5081_v45, %v7842_v47  ;;  %v5096_v19 = vcombine.high %v5088_v5, %v5088_v5  ;;  %v5104_v20 = vrot.slane %v5088_v5, %v7842_v47  ;;  %5964 = vst.sshfl [vmem:[%s7847_s22 + $0x6] sm:$0x1 pattern:$0x73625140] %v5088_v5  ;;  %v5809_v21 = vrot.slane %v5781_v42, %v7842_v47 }
 0x253   : > { %5971 = vst.sshfl [vmem:[%s7847_s22 + $0x2f] sm:$0x1 pattern:$0x73625140] %v5781_v42  ;;  %v5811_v22 = vcombine.high %v5795_v31, %v5795_v31  ;;  %v5812_v60 = vcombine.high %v5802_v16, %v5802_v16  ;;  %5824 = vst [vmem:[%s7847_s22 + $0x17] sm:$0x1] %v5810_v17 }
 0x254   : > { %v5097_v23 = vcombine.high %v5095_v18, %v5095_v18  ;;  %v5111_v24 = vrot.slane %v5095_v18, %v7842_v47  ;;  %v5118_v25 = vrot.slane %v5096_v19, %v7842_v47  ;;  %v5126_v7 = vcombine.high %v5104_v20, %v5104_v20  ;;  %5965 = vst.sshfl [vmem:[%s7847_s22 + $0xe] sm:$0x1 pattern:$0x73625140] %v5096_v19 }
 0x255   : > { %5966 = vst.sshfl [vmem:[%s7847_s22 + $0x26] sm:$0x1 pattern:$0x73625140] %v5095_v18  ;;  %v5813_v8 = vcombine.high %v5809_v21, %v5809_v21  ;;  %5825 = vst [vmem:[%s7847_s22 + $0x1f] sm:$0x1] %v5812_v60 }
 0x256   : > { %5828 = vst [vmem:[%s7847_s22 + $0x37] sm:$0x1] %v5811_v22  ;;  %v5125_v26 = vrot.slane %v5097_v23, %v7842_v47  ;;  %v5127_v9 = vcombine.high %v5111_v24, %v5111_v24  ;;  %v5128_v27 = vcombine.high %v5118_v25, %v5118_v25  ;;  %5140 = vst [vmem:[%s7847_s22 + $0x16] sm:$0x1] %v5126_v7 }
 0x257   : > { %5967 = vst.sshfl [vmem:[%s7847_s22 + $0x2e] sm:$0x1 pattern:$0x73625140] %v5097_v23  ;;  %5829 = vst [vmem:[%s7847_s22 + $0x3f] sm:$0x1] %v5813_v8 }
 0x258   : > { %v5129_v30 = vcombine.high %v5125_v26, %v5125_v26  ;;  %5141 = vst [vmem:[%s7847_s22 + $0x1e] sm:$0x1] %v5128_v27  ;;  %5144 = vst [vmem:[%s7847_s22 + $0x36] sm:$0x1] %v5127_v9 }
 0x25a   : > { %5145 = vst [vmem:[%s7847_s22 + $0x3e] sm:$0x1] %v5129_v30 }
 0x25b   : > { %6739 = shalt.err (!%p6736_p5)
}
 0x25c   : > { %s6740_s4 = scalar_lea.hbm %s7960_s26, 1024  ;;  %s6744_s7 = scalar_lea.hbm %s8012_s2, 2048 }
 0x25d   : > { %p6741_p7 = scmp.ne.s32.totalorder %s7960_s26, %s6740_s4  ;;  %p6745_p12 = scmp.lt.u32.totalorder %s7960_s26, %s8012_s2 }
 0x25e   : > { %p6746_p13 = scmp.lt.u32.totalorder %s6744_s7, %s6740_s4  ;;  %p6748_p1 = scmp.lt.u32.totalorder %s6740_s4, %s7960_s26 }
 0x25f   : > { %p6742_p10 = pnand %p6741_p7, %p6855_p6 }
 0x260   : > { %p6747_p0 = por %p6746_p13, %p6745_p12 }
 0x261   : > { %p6743_p11 = pneg %p6742_p10 }
 0x262   : > { %p6749_p2 = por %p6748_p1, %p6747_p0 }
 0x264   : > { %p6750_p3 = pnand %p6749_p2, %p6743_p11 }
 0x266   : > { %6753 = shalt.err (!%p6750_p3)
}
 0x267   : > { %s6795_s17 = smov 128   ;;  %s6796_s19 = smov 256  }
 0x268   : > { %s6797_s22 = smov 8  }
 0x269   : > { %6680 = dma.vmem_to_hbm [thread:$0]  (%p6855_p6), %s7963_s24, 1024, %s7960_s26, %s5831_s27, %s6795_s17, %s6796_s19, %s6797_s22  }
 0x26a PF: > { %s5858_s23 = sand.u32 1, %s6776_s9   ;;  %p6683_p4 = pnand %p5931_p9, %p6859_p8 }
 0x26b   : > { %s5859_s13 = scalar_lea.sflag [#allocation5], %s5858_s23 }
 0x26c   : > { %6771 = dma.done.wait (!%p6683_p4), %s5859_s13, 1024  }
 0x26d   : > { %6773 = vsyncadd (!%p6683_p4), %s5859_s13, 4294966272  ;;  %p12_p5 = scmp.ge.s32.totalorder %s6836_s15, 4   ;;  %s8016_s9 = smov %s6780_s10 }
 0x26e   : > { %s8017_s10 = smov %s6784_s11  ;;  %s8018_s11 = smov %s6849_s18 }
 0x26f   : > { %s8019_s12 = smov %s6836_s15  ;;  %14 = sbr.rel (!%p12_p5) target bundleno = 3 (0x3), region = 152 }
 0x276   :  { %5864 = vsyncpa [#allocation5], 1 }
 0x277   :  { %5866 = vsyncpa [#allocation5 + $0x1], 1 }

</bundles_post_ra>
